<compile_context>
chip_gen: v6e
topology: v6e:2x2x1
jax: 0.10.0
libtpu: 0.0.40
codegen_flags: <defaults>
</compile_context>

<pallas_src>
import functools

import jax
import jax.numpy as jnp
from jax import lax
from jax.experimental import pallas as pl
from jax.experimental.pallas import tpu as pltpu

# --------------------------------------------------------------------------
# Model hyper-parameters (match the PyTorch module).
# --------------------------------------------------------------------------
INPUT_SIZE = 75
HIDDEN_SIZE = 32
NUM_LAYERS = 2
OUTPUT_SIZE = 1500            # forward() reshapes to (-1, 20, 75)

LANE = 128                    # lane width of a vreg
SUB = 8                       # sublane count of a vreg
H = HIDDEN_SIZE
OUT_PAD = ((OUTPUT_SIZE + LANE - 1) // LANE) * LANE    # 1536

VMEM_SPEC = pl.BlockSpec(memory_space=pltpu.MemorySpace.VMEM)
ANY_SPEC = pl.BlockSpec(memory_space=pl.ANY)


def _round_up(n, m):
    return ((n + m - 1) // m) * m


# --------------------------------------------------------------------------
# Fused Pallas kernel: GRU layer 1 -> GRU layer 2 -> Linear
# --------------------------------------------------------------------------
def generator_kernel(x_ref,
                     wih1_ref, whh1_ref, b1_ref, bhn1_ref,
                     b2_ref, bhn2_ref, bfc_ref,
                     wih2_hbm, whh2_hbm, wfc_hbm,
                     out_ref,
                     gi_scr, hseq_scr, fc_lhs_scr,
                     wih2_vmem, whh2_vmem, wfc_vmem, dma_sem,
                     *, bp, batch):
    """Shapes (all padded / packed):

    x_ref:      (T*bp, 128) f32   input, features zero-padded 75->128,
                                  row index = t*bp + b (time-major)
    wih1_ref:   (128, 128)  bf16  input->gates, packed gate cols [n|r|z|pad]
    wih2/whh*:  (32, 128)   bf16  hidden->gates, same packed gate columns
    b*_ref:     (1, 128)    f32   b_ih (+ b_hh folded for r,z), packed cols
    bhn*_ref:   (1, 32)     f32   b_hh of the n gate only
    wfc:        (32, 1536)  bf16  fc weight (cols 1500:1536 zero)
    bfc_ref:    (1, 1536)   f32
    out_ref:    (B*T, 1536) f32   fc output, batch-major rows (b*T + t)
    gi_scr:     (T*bp, 128) f32   hoisted input projection (reused per layer)
    hseq_scr:   (T*bp, 32)  f32   per-layer hidden-state sequence (reused)
    fc_lhs_scr: (B*T, 32)   f32   valid hidden rows, batch-major
    """
    # -- kick off layer-2 / FC weight DMAs; they land while layer 1 runs -----
    wih2_cp = pltpu.make_async_copy(wih2_hbm, wih2_vmem, dma_sem.at[0])
    whh2_cp = pltpu.make_async_copy(whh2_hbm, whh2_vmem, dma_sem.at[1])
    wfc_cp = pltpu.make_async_copy(wfc_hbm, wfc_vmem, dma_sem.at[2])
    wih2_cp.start()
    whh2_cp.start()
    wfc_cp.start()

    n_steps = x_ref.shape[0] // bp

    def gru_layer(inp_bf16, wih_bf16, whh_bf16, b_ref, bhn_ref):
        # Hoisted input projection: one MXU pass for the whole sequence.
        gi_scr[...] = (jnp.dot(inp_bf16, wih_bf16,
                               preferred_element_type=jnp.float32)
                       + b_ref[...])
        b_hn = bhn_ref[...]                                   # (1, H) f32
        h = jnp.zeros((bp, H), jnp.float32)

        # Tiny static trip count -> fully unrolled, static slices only.
        # whh_bf16 is a loop-invariant vreg value (single VMEM load).
        for t in range(n_steps):
            lo = t * bp
            gi = gi_scr[lo:lo + bp, :]                        # (bp, 128)
            gh = jnp.dot(h.astype(jnp.bfloat16), whh_bf16,
                         preferred_element_type=jnp.float32)  # (bp, 128)
            pre = gi + gh
            r = jax.nn.sigmoid(pre[:, H:2 * H])               # (bp, H)
            z = jax.nn.sigmoid(pre[:, 2 * H:3 * H])           # (bp, H)
            n = jnp.tanh(gi[:, :H] + r * (gh[:, :H] + b_hn))  # (bp, H)
            h = (1.0 - z) * n + z * h
            hseq_scr[lo:lo + bp, :] = h

    # Layer 1 consumes x; its weights were part of the normal (blocking)
    # input DMA so they are resident at kernel entry.
    gru_layer(x_ref[...].astype(jnp.bfloat16),
              wih1_ref[...], whh1_ref[...], b1_ref, bhn1_ref)

    # Layer 2 consumes layer 1's hidden sequence (fully read into its GI
    # before hseq_scr is overwritten).  Its weights were prefetched above.
    wih2_cp.wait()
    whh2_cp.wait()
    gru_layer(hseq_scr[...].astype(jnp.bfloat16),
              wih2_vmem[...], whh2_vmem[...], b2_ref, bhn2_ref)

    # Gather the B*T valid rows batch-major:  fc row b*T + t <- hseq row
    # t*bp + b.  stride == bp == 8 sublanes -> one sublane per f32 tile.
    for b in range(batch):
        fc_lhs_scr[b * n_steps:(b + 1) * n_steps, :] = (
            hseq_scr[pl.ds(b, n_steps, stride=bp), :])

    # Final Linear over the valid rows in one MXU pass.
    wfc_cp.wait()
    out_ref[...] = (jnp.dot(fc_lhs_scr[...].astype(jnp.bfloat16),
                            wfc_vmem[...],
                            preferred_element_type=jnp.float32)
                    + bfc_ref[...])


# --------------------------------------------------------------------------
# Forward wrapper
# --------------------------------------------------------------------------
@jax.jit
def generator_forward(x, kparams):
    """x: (B, T, INPUT_SIZE) f32  ->  (B*T, 20, 75) f32 (matches the module)."""
    B, T, D = x.shape
    bp = _round_up(B, SUB)
    d_pad = _round_up(D, LANE)

    x_tm = jnp.transpose(x, (1, 0, 2)).astype(jnp.float32)        # (T, B, D)
    x_tm = jnp.pad(x_tm, ((0, 0), (0, bp - B), (0, d_pad - D)))   # (T, bp, dp)
    x_flat = x_tm.reshape(T * bp, d_pad)

    l1, l2 = kparams["gru"]
    out = pl.pallas_call(
        functools.partial(generator_kernel, bp=bp, batch=B),
        out_shape=jax.ShapeDtypeStruct((B * T, OUT_PAD), jnp.float32),
        in_specs=[VMEM_SPEC] * 8 + [ANY_SPEC] * 3,
        out_specs=VMEM_SPEC,
        scratch_shapes=[
            pltpu.VMEM((T * bp, LANE), jnp.float32),    # gi_scr
            pltpu.VMEM((T * bp, H), jnp.float32),       # hseq_scr
            pltpu.VMEM((B * T, H), jnp.float32),        # fc_lhs_scr
            pltpu.VMEM((H, LANE), jnp.bfloat16),        # wih2 landing buffer
            pltpu.VMEM((H, LANE), jnp.bfloat16),        # whh2 landing buffer
            pltpu.VMEM((H, OUT_PAD), jnp.bfloat16),     # wfc  landing buffer
            pltpu.SemaphoreType.DMA((3,)),
        ],
    )(x_flat,
      l1["w_ih"], l1["w_hh"], l1["b"], l1["b_hn"],
      l2["b"], l2["b_hn"], kparams["fc"]["b"],
      l2["w_ih"], l2["w_hh"], kparams["fc"]["w"])

    return out[:, :OUTPUT_SIZE].reshape(-1, 20, 75)


# --------------------------------------------------------------------------
# Parameters: canonical (PyTorch layout) + packed/padded kernel layout
# --------------------------------------------------------------------------
def init_params(key):
    """PyTorch-style layout: w_ih (3H, d_in), w_hh (3H, H), biases (3H,)."""
    params = {"gru": [], "fc": {}}
    k = 1.0 / jnp.sqrt(jnp.float32(HIDDEN_SIZE))
    for layer in range(NUM_LAYERS):
        d_in = INPUT_SIZE if layer == 0 else HIDDEN_SIZE
        key, k1, k2, k3, k4 = jax.random.split(key, 5)
        params["gru"].append({
            "w_ih": jax.random.uniform(k1, (3 * H, d_in), minval=-k, maxval=k,
                                       dtype=jnp.float32),
            "w_hh": jax.random.uniform(k2, (3 * H, H), minval=-k, maxval=k,
                                       dtype=jnp.float32),
            "b_ih": jax.random.uniform(k3, (3 * H,), minval=-k, maxval=k,
                                       dtype=jnp.float32),
            "b_hh": jax.random.uniform(k4, (3 * H,), minval=-k, maxval=k,
                                       dtype=jnp.float32),
        })
    key, k1, k2 = jax.random.split(key, 3)
    params["fc"]["w"] = jax.random.uniform(k1, (OUTPUT_SIZE, H),
                                           minval=-k, maxval=k, dtype=jnp.float32)
    params["fc"]["b"] = jax.random.uniform(k2, (OUTPUT_SIZE,),
                                           minval=-k, maxval=k, dtype=jnp.float32)
    return params


# PyTorch stacks gate rows in (r, z, n) order; in the kernel the three gates
# share ONE 128-lane block in [n | r | z | pad] order (n first so it lands on
# the same lanes as the hidden state / blend).
_PT_GATE_ORDER = ("r", "z", "n")
_GATE_LANE = {"n": 0, "r": H, "z": 2 * H}


def pack_params(params):
    """Build the packed, lane-aligned bf16 layouts the kernel expects."""
    kp = {"gru": [], "fc": {}}
    for layer, lyr in enumerate(params["gru"]):
        d_in = lyr["w_ih"].shape[1]
        rows = _round_up(d_in, LANE) if layer == 0 else d_in   # x is lane-padded
        w_ih_t = lyr["w_ih"].T                                 # (d_in, 3H)
        w_hh_t = lyr["w_hh"].T                                 # (H, 3H)
        w_ih_p = jnp.zeros((rows, LANE), jnp.float32)
        w_hh_p = jnp.zeros((H, LANE), jnp.float32)
        b_p = jnp.zeros((1, LANE), jnp.float32)
        for g, name in enumerate(_PT_GATE_ORDER):
            lo = _GATE_LANE[name]
            w_ih_p = w_ih_p.at[:d_in, lo:lo + H].set(w_ih_t[:, g * H:(g + 1) * H])
            w_hh_p = w_hh_p.at[:, lo:lo + H].set(w_hh_t[:, g * H:(g + 1) * H])
            b_g = lyr["b_ih"][g * H:(g + 1) * H]
            if name != "n":                 # fold b_hh for the r and z gates
                b_g = b_g + lyr["b_hh"][g * H:(g + 1) * H]
            b_p = b_p.at[0, lo:lo + H].set(b_g)
        b_hn = lyr["b_hh"][2 * H:3 * H].reshape(1, H)
        kp["gru"].append({"w_ih": w_ih_p.astype(jnp.bfloat16),
                          "w_hh": w_hh_p.astype(jnp.bfloat16),
                          "b": b_p, "b_hn": b_hn})
    w_fc_p = jnp.zeros((H, OUT_PAD), jnp.float32).at[:, :OUTPUT_SIZE].set(
        params["fc"]["w"].T)
    b_fc_p = jnp.zeros((1, OUT_PAD), jnp.float32).at[0, :OUTPUT_SIZE].set(
        params["fc"]["b"])
    kp["fc"] = {"w": w_fc_p.astype(jnp.bfloat16), "b": b_fc_p}
    return kp


# --------------------------------------------------------------------------
# Pure-JAX reference (canonical params) for correctness checks.
# matmul_dtype=None      -> exact f32 semantics of the original module.
# matmul_dtype=bfloat16  -> same matmul-operand precision as the kernel.
# --------------------------------------------------------------------------
def generator_reference(x, params, matmul_dtype=None):
    B, T, _ = x.shape

    def mm(a, b):
        if matmul_dtype is not None:
            a = a.astype(matmul_dtype)
            b = b.astype(matmul_dtype)
        return jnp.dot(a, b, preferred_element_type=jnp.float32)

    h_seq = x.astype(jnp.float32)
    for lyr in params["gru"]:
        w_ih_t, w_hh_t = lyr["w_ih"].T, lyr["w_hh"].T
        b_ih, b_hh = lyr["b_ih"], lyr["b_hh"]

        def step(h_prev, x_t, w_ih_t=w_ih_t, w_hh_t=w_hh_t, b_ih=b_ih, b_hh=b_hh):
            gi = mm(x_t, w_ih_t) + b_ih
            gh = mm(h_prev, w_hh_t) + b_hh
            r = jax.nn.sigmoid(gi[:, :H] + gh[:, :H])
            z = jax.nn.sigmoid(gi[:, H:2 * H] + gh[:, H:2 * H])
            n = jnp.tanh(gi[:, 2 * H:] + r * gh[:, 2 * H:])
            h_new = (1.0 - z) * n + z * h_prev
            return h_new, h_new

        h0 = jnp.zeros((B, H), jnp.float32)
        _, outs = lax.scan(step, h0, jnp.transpose(h_seq, (1, 0, 2)))
        h_seq = jnp.transpose(outs, (1, 0, 2))                  # (B, T, H)
    out = mm(h_seq.reshape(B * T, H), params["fc"]["w"].T) + params["fc"]["b"]
    return out.reshape(-1, 20, 75)


# --------------------------------------------------------------------------
if __name__ == "__main__":
    key = jax.random.PRNGKey(0)
    key, pkey, xkey = jax.random.split(key, 3)

    params = init_params(pkey)
    kparams = pack_params(params)

    B, T = 2, 8
    x = jax.random.normal(xkey, (B, T, INPUT_SIZE), dtype=jnp.float32)

    y = jax.block_until_ready(generator_forward(x, kparams))
    assert y.shape == (B * T, 20, 75), y.shape

    # Tight check vs a reference using the same bf16 matmul-operand precision
    # (validates packing / gate layout / recurrence / gather logic).
    y_bf16 = generator_reference(x, params, matmul_dtype=jnp.bfloat16)
    err_bf16 = float(jnp.max(jnp.abs(y - y_bf16)))
    assert jnp.allclose(y, y_bf16, rtol=5e-3, atol=5e-3), err_bf16

    # Loose sanity check vs the original full-f32 semantics (bf16 operands
    # lose ~2^-9 relative per product through 2 GRU layers + FC).
    y_f32 = generator_reference(x, params, matmul_dtype=None)
    err_f32 = float(jnp.max(jnp.abs(y - y_f32)))
    assert jnp.allclose(y, y_f32, rtol=5e-2, atol=5e-2), err_f32

    print("KERNEL_OK")
</pallas_src>

<mosaic_0001>
module attributes {stable_mosaic.version = 11 : i64} {
  func.func @generator_kernel(%arg0: memref<64x128xf32, #tpu.memory_space<vmem>>, %arg1: memref<128x128xbf16, #tpu.memory_space<vmem>>, %arg2: memref<32x128xbf16, #tpu.memory_space<vmem>>, %arg3: memref<1x128xf32, #tpu.memory_space<vmem>>, %arg4: memref<1x32xf32, #tpu.memory_space<vmem>>, %arg5: memref<1x128xf32, #tpu.memory_space<vmem>>, %arg6: memref<1x32xf32, #tpu.memory_space<vmem>>, %arg7: memref<1x1536xf32, #tpu.memory_space<vmem>>, %arg8: memref<32x128xbf16, #tpu.memory_space<any>>, %arg9: memref<32x128xbf16, #tpu.memory_space<any>>, %arg10: memref<32x1536xbf16, #tpu.memory_space<any>>, %arg11: memref<16x1536xf32, #tpu.memory_space<vmem>>, %arg12: memref<64x128xf32, #tpu.memory_space<vmem>>, %arg13: memref<64x32xf32, #tpu.memory_space<vmem>>, %arg14: memref<16x32xf32, #tpu.memory_space<vmem>>, %arg15: memref<32x128xbf16, #tpu.memory_space<vmem>>, %arg16: memref<32x128xbf16, #tpu.memory_space<vmem>>, %arg17: memref<32x1536xbf16, #tpu.memory_space<vmem>>, %arg18: memref<3x!tpu.dma_semaphore, #tpu.memory_space<semaphore_mem>>) attributes {dimension_semantics = [], scalar_prefetch = 0 : i64, scratch_operands = 7 : i64, tpu.core_type = #tpu.core_type<tc>} {
    %c0_i32 = arith.constant 0 : i32
    %0 = tpu.memref_slice %arg18[%c0_i32] : memref<3x!tpu.dma_semaphore, #tpu.memory_space<semaphore_mem>> -> memref<1x!tpu.dma_semaphore, #tpu.memory_space<semaphore_mem>>
    %1 = tpu.memref_squeeze %0 : memref<1x!tpu.dma_semaphore, #tpu.memory_space<semaphore_mem>> -> memref<!tpu.dma_semaphore, #tpu.memory_space<semaphore_mem>>
    tpu.enqueue_dma source(%arg8 : memref<32x128xbf16, #tpu.memory_space<any>>) target(%arg15 : memref<32x128xbf16, #tpu.memory_space<vmem>>) target_semaphore(%1 : memref<!tpu.dma_semaphore, #tpu.memory_space<semaphore_mem>>)
    %c1_i32 = arith.constant 1 : i32
    %2 = tpu.memref_slice %arg18[%c1_i32] : memref<3x!tpu.dma_semaphore, #tpu.memory_space<semaphore_mem>> -> memref<1x!tpu.dma_semaphore, #tpu.memory_space<semaphore_mem>>
    %3 = tpu.memref_squeeze %2 : memref<1x!tpu.dma_semaphore, #tpu.memory_space<semaphore_mem>> -> memref<!tpu.dma_semaphore, #tpu.memory_space<semaphore_mem>>
    tpu.enqueue_dma source(%arg9 : memref<32x128xbf16, #tpu.memory_space<any>>) target(%arg16 : memref<32x128xbf16, #tpu.memory_space<vmem>>) target_semaphore(%3 : memref<!tpu.dma_semaphore, #tpu.memory_space<semaphore_mem>>)
    %c2_i32 = arith.constant 2 : i32
    %4 = tpu.memref_slice %arg18[%c2_i32] : memref<3x!tpu.dma_semaphore, #tpu.memory_space<semaphore_mem>> -> memref<1x!tpu.dma_semaphore, #tpu.memory_space<semaphore_mem>>
    %5 = tpu.memref_squeeze %4 : memref<1x!tpu.dma_semaphore, #tpu.memory_space<semaphore_mem>> -> memref<!tpu.dma_semaphore, #tpu.memory_space<semaphore_mem>>
    tpu.enqueue_dma source(%arg10 : memref<32x1536xbf16, #tpu.memory_space<any>>) target(%arg17 : memref<32x1536xbf16, #tpu.memory_space<vmem>>) target_semaphore(%5 : memref<!tpu.dma_semaphore, #tpu.memory_space<semaphore_mem>>)
    %c0 = arith.constant 0 : index
    %c0_0 = arith.constant 0 : index
    %6 = vector.load %arg0[%c0, %c0_0] : memref<64x128xf32, #tpu.memory_space<vmem>>, vector<64x128xf32>
    %7 = arith.truncf %6 : vector<64x128xf32> to vector<64x128xbf16>
    %c0_1 = arith.constant 0 : index
    %c0_2 = arith.constant 0 : index
    %8 = vector.load %arg1[%c0_1, %c0_2] : memref<128x128xbf16, #tpu.memory_space<vmem>>, vector<128x128xbf16>
    %c0_3 = arith.constant 0 : index
    %c0_4 = arith.constant 0 : index
    %9 = vector.load %arg2[%c0_3, %c0_4] : memref<32x128xbf16, #tpu.memory_space<vmem>>, vector<32x128xbf16>
    %cst = arith.constant dense<0.000000e+00> : vector<64x128xf32>
    %10 = tpu.matmul %7, %8, %cst {dimension_numbers = #tpu.dot_dimension_numbers<[1], [0], [0], [1], [0, 0, 1, 1], [], []>} : vector<64x128xbf16>, vector<128x128xbf16>, vector<64x128xf32> -> vector<64x128xf32>
    %c0_5 = arith.constant 0 : index
    %c0_6 = arith.constant 0 : index
    %11 = vector.load %arg3[%c0_5, %c0_6] : memref<1x128xf32, #tpu.memory_space<vmem>>, vector<1x128xf32>
    %12 = vector.broadcast %11 : vector<1x128xf32> to vector<64x128xf32>
    %13 = arith.addf %10, %12 : vector<64x128xf32>
    %c0_7 = arith.constant 0 : index
    %c0_8 = arith.constant 0 : index
    %14 = vector.load %arg12[%c0_7, %c0_8] : memref<64x128xf32, #tpu.memory_space<vmem>>, vector<64x128xf32>
    tpu.vector_store %arg12[%c0_7, %c0_8], %13 {strides = array<i32>} : memref<64x128xf32, #tpu.memory_space<vmem>>, vector<64x128xf32>,
    %c0_9 = arith.constant 0 : index
    %c0_10 = arith.constant 0 : index
    %15 = vector.load %arg4[%c0_9, %c0_10] : memref<1x32xf32, #tpu.memory_space<vmem>>, vector<1x32xf32>
    %cst_11 = arith.constant 0.000000e+00 : f32
    %16 = vector.broadcast %cst_11 : f32 to vector<8x32xf32>
    %c0_12 = arith.constant 0 : index
    %c0_13 = arith.constant 0 : index
    %17 = vector.load %arg12[%c0_12, %c0_13] : memref<64x128xf32, #tpu.memory_space<vmem>>, vector<8x128xf32>
    %18 = arith.truncf %16 : vector<8x32xf32> to vector<8x32xbf16>
    %cst_14 = arith.constant dense<0.000000e+00> : vector<8x128xf32>
    %19 = tpu.matmul %18, %9, %cst_14 {dimension_numbers = #tpu.dot_dimension_numbers<[1], [0], [0], [1], [0, 0, 1, 1], [], []>} : vector<8x32xbf16>, vector<32x128xbf16>, vector<8x128xf32> -> vector<8x128xf32>
    %20 = arith.addf %17, %19 : vector<8x128xf32>
    %21 = vector.extract_strided_slice %20 {offsets = [0, 32], sizes = [8, 32], strides = [1, 1]} : vector<8x128xf32> to vector<8x32xf32>
    %22 = arith.negf %21 : vector<8x32xf32>
    %23 = math.exp %22 : vector<8x32xf32>
    %cst_15 = arith.constant 1.000000e+00 : f32
    %24 = vector.broadcast %cst_15 : f32 to vector<8x32xf32>
    %25 = arith.addf %24, %23 : vector<8x32xf32>
    %26 = arith.divf %24, %25 : vector<8x32xf32>
    %27 = vector.extract_strided_slice %20 {offsets = [0, 64], sizes = [8, 32], strides = [1, 1]} : vector<8x128xf32> to vector<8x32xf32>
    %28 = arith.negf %27 : vector<8x32xf32>
    %29 = math.exp %28 : vector<8x32xf32>
    %cst_16 = arith.constant 1.000000e+00 : f32
    %30 = vector.broadcast %cst_16 : f32 to vector<8x32xf32>
    %31 = arith.addf %30, %29 : vector<8x32xf32>
    %32 = arith.divf %30, %31 : vector<8x32xf32>
    %33 = vector.extract_strided_slice %17 {offsets = [0, 0], sizes = [8, 32], strides = [1, 1]} : vector<8x128xf32> to vector<8x32xf32>
    %34 = vector.extract_strided_slice %19 {offsets = [0, 0], sizes = [8, 32], strides = [1, 1]} : vector<8x128xf32> to vector<8x32xf32>
    %35 = vector.broadcast %15 : vector<1x32xf32> to vector<8x32xf32>
    %36 = arith.addf %34, %35 : vector<8x32xf32>
    %37 = arith.mulf %26, %36 : vector<8x32xf32>
    %38 = arith.addf %33, %37 : vector<8x32xf32>
    %39 = math.tanh %38 : vector<8x32xf32>
    %cst_17 = arith.constant 1.000000e+00 : f32
    %40 = vector.broadcast %cst_17 : f32 to vector<8x32xf32>
    %41 = arith.subf %40, %32 : vector<8x32xf32>
    %42 = arith.mulf %41, %39 : vector<8x32xf32>
    %43 = arith.mulf %32, %16 : vector<8x32xf32>
    %44 = arith.addf %42, %43 : vector<8x32xf32>
    %c0_18 = arith.constant 0 : index
    %c0_19 = arith.constant 0 : index
    %45 = vector.load %arg13[%c0_18, %c0_19] : memref<64x32xf32, #tpu.memory_space<vmem>>, vector<8x32xf32>
    tpu.vector_store %arg13[%c0_18, %c0_19], %44 {strides = array<i32>} : memref<64x32xf32, #tpu.memory_space<vmem>>, vector<8x32xf32>,
    %c8 = arith.constant 8 : index
    %c0_20 = arith.constant 0 : index
    %46 = vector.load %arg12[%c8, %c0_20] : memref<64x128xf32, #tpu.memory_space<vmem>>, vector<8x128xf32>
    %47 = arith.truncf %44 : vector<8x32xf32> to vector<8x32xbf16>
    %cst_21 = arith.constant dense<0.000000e+00> : vector<8x128xf32>
    %48 = tpu.matmul %47, %9, %cst_21 {dimension_numbers = #tpu.dot_dimension_numbers<[1], [0], [0], [1], [0, 0, 1, 1], [], []>} : vector<8x32xbf16>, vector<32x128xbf16>, vector<8x128xf32> -> vector<8x128xf32>
    %49 = arith.addf %46, %48 : vector<8x128xf32>
    %50 = vector.extract_strided_slice %49 {offsets = [0, 32], sizes = [8, 32], strides = [1, 1]} : vector<8x128xf32> to vector<8x32xf32>
    %51 = arith.negf %50 : vector<8x32xf32>
    %52 = math.exp %51 : vector<8x32xf32>
    %cst_22 = arith.constant 1.000000e+00 : f32
    %53 = vector.broadcast %cst_22 : f32 to vector<8x32xf32>
    %54 = arith.addf %53, %52 : vector<8x32xf32>
    %55 = arith.divf %53, %54 : vector<8x32xf32>
    %56 = vector.extract_strided_slice %49 {offsets = [0, 64], sizes = [8, 32], strides = [1, 1]} : vector<8x128xf32> to vector<8x32xf32>
    %57 = arith.negf %56 : vector<8x32xf32>
    %58 = math.exp %57 : vector<8x32xf32>
    %cst_23 = arith.constant 1.000000e+00 : f32
    %59 = vector.broadcast %cst_23 : f32 to vector<8x32xf32>
    %60 = arith.addf %59, %58 : vector<8x32xf32>
    %61 = arith.divf %59, %60 : vector<8x32xf32>
    %62 = vector.extract_strided_slice %46 {offsets = [0, 0], sizes = [8, 32], strides = [1, 1]} : vector<8x128xf32> to vector<8x32xf32>
    %63 = vector.extract_strided_slice %48 {offsets = [0, 0], sizes = [8, 32], strides = [1, 1]} : vector<8x128xf32> to vector<8x32xf32>
    %64 = vector.broadcast %15 : vector<1x32xf32> to vector<8x32xf32>
    %65 = arith.addf %63, %64 : vector<8x32xf32>
    %66 = arith.mulf %55, %65 : vector<8x32xf32>
    %67 = arith.addf %62, %66 : vector<8x32xf32>
    %68 = math.tanh %67 : vector<8x32xf32>
    %cst_24 = arith.constant 1.000000e+00 : f32
    %69 = vector.broadcast %cst_24 : f32 to vector<8x32xf32>
    %70 = arith.subf %69, %61 : vector<8x32xf32>
    %71 = arith.mulf %70, %68 : vector<8x32xf32>
    %72 = arith.mulf %61, %44 : vector<8x32xf32>
    %73 = arith.addf %71, %72 : vector<8x32xf32>
    %c8_25 = arith.constant 8 : index
    %c0_26 = arith.constant 0 : index
    %74 = vector.load %arg13[%c8_25, %c0_26] : memref<64x32xf32, #tpu.memory_space<vmem>>, vector<8x32xf32>
    tpu.vector_store %arg13[%c8_25, %c0_26], %73 {strides = array<i32>} : memref<64x32xf32, #tpu.memory_space<vmem>>, vector<8x32xf32>,
    %c16 = arith.constant 16 : index
    %c0_27 = arith.constant 0 : index
    %75 = vector.load %arg12[%c16, %c0_27] : memref<64x128xf32, #tpu.memory_space<vmem>>, vector<8x128xf32>
    %76 = arith.truncf %73 : vector<8x32xf32> to vector<8x32xbf16>
    %cst_28 = arith.constant dense<0.000000e+00> : vector<8x128xf32>
    %77 = tpu.matmul %76, %9, %cst_28 {dimension_numbers = #tpu.dot_dimension_numbers<[1], [0], [0], [1], [0, 0, 1, 1], [], []>} : vector<8x32xbf16>, vector<32x128xbf16>, vector<8x128xf32> -> vector<8x128xf32>
    %78 = arith.addf %75, %77 : vector<8x128xf32>
    %79 = vector.extract_strided_slice %78 {offsets = [0, 32], sizes = [8, 32], strides = [1, 1]} : vector<8x128xf32> to vector<8x32xf32>
    %80 = arith.negf %79 : vector<8x32xf32>
    %81 = math.exp %80 : vector<8x32xf32>
    %cst_29 = arith.constant 1.000000e+00 : f32
    %82 = vector.broadcast %cst_29 : f32 to vector<8x32xf32>
    %83 = arith.addf %82, %81 : vector<8x32xf32>
    %84 = arith.divf %82, %83 : vector<8x32xf32>
    %85 = vector.extract_strided_slice %78 {offsets = [0, 64], sizes = [8, 32], strides = [1, 1]} : vector<8x128xf32> to vector<8x32xf32>
    %86 = arith.negf %85 : vector<8x32xf32>
    %87 = math.exp %86 : vector<8x32xf32>
    %cst_30 = arith.constant 1.000000e+00 : f32
    %88 = vector.broadcast %cst_30 : f32 to vector<8x32xf32>
    %89 = arith.addf %88, %87 : vector<8x32xf32>
    %90 = arith.divf %88, %89 : vector<8x32xf32>
    %91 = vector.extract_strided_slice %75 {offsets = [0, 0], sizes = [8, 32], strides = [1, 1]} : vector<8x128xf32> to vector<8x32xf32>
    %92 = vector.extract_strided_slice %77 {offsets = [0, 0], sizes = [8, 32], strides = [1, 1]} : vector<8x128xf32> to vector<8x32xf32>
    %93 = vector.broadcast %15 : vector<1x32xf32> to vector<8x32xf32>
    %94 = arith.addf %92, %93 : vector<8x32xf32>
    %95 = arith.mulf %84, %94 : vector<8x32xf32>
    %96 = arith.addf %91, %95 : vector<8x32xf32>
    %97 = math.tanh %96 : vector<8x32xf32>
    %cst_31 = arith.constant 1.000000e+00 : f32
    %98 = vector.broadcast %cst_31 : f32 to vector<8x32xf32>
    %99 = arith.subf %98, %90 : vector<8x32xf32>
    %100 = arith.mulf %99, %97 : vector<8x32xf32>
    %101 = arith.mulf %90, %73 : vector<8x32xf32>
    %102 = arith.addf %100, %101 : vector<8x32xf32>
    %c16_32 = arith.constant 16 : index
    %c0_33 = arith.constant 0 : index
    %103 = vector.load %arg13[%c16_32, %c0_33] : memref<64x32xf32, #tpu.memory_space<vmem>>, vector<8x32xf32>
    tpu.vector_store %arg13[%c16_32, %c0_33], %102 {strides = array<i32>} : memref<64x32xf32, #tpu.memory_space<vmem>>, vector<8x32xf32>,
    %c24 = arith.constant 24 : index
    %c0_34 = arith.constant 0 : index
    %104 = vector.load %arg12[%c24, %c0_34] : memref<64x128xf32, #tpu.memory_space<vmem>>, vector<8x128xf32>
    %105 = arith.truncf %102 : vector<8x32xf32> to vector<8x32xbf16>
    %cst_35 = arith.constant dense<0.000000e+00> : vector<8x128xf32>
    %106 = tpu.matmul %105, %9, %cst_35 {dimension_numbers = #tpu.dot_dimension_numbers<[1], [0], [0], [1], [0, 0, 1, 1], [], []>} : vector<8x32xbf16>, vector<32x128xbf16>, vector<8x128xf32> -> vector<8x128xf32>
    %107 = arith.addf %104, %106 : vector<8x128xf32>
    %108 = vector.extract_strided_slice %107 {offsets = [0, 32], sizes = [8, 32], strides = [1, 1]} : vector<8x128xf32> to vector<8x32xf32>
    %109 = arith.negf %108 : vector<8x32xf32>
    %110 = math.exp %109 : vector<8x32xf32>
    %cst_36 = arith.constant 1.000000e+00 : f32
    %111 = vector.broadcast %cst_36 : f32 to vector<8x32xf32>
    %112 = arith.addf %111, %110 : vector<8x32xf32>
    %113 = arith.divf %111, %112 : vector<8x32xf32>
    %114 = vector.extract_strided_slice %107 {offsets = [0, 64], sizes = [8, 32], strides = [1, 1]} : vector<8x128xf32> to vector<8x32xf32>
    %115 = arith.negf %114 : vector<8x32xf32>
    %116 = math.exp %115 : vector<8x32xf32>
    %cst_37 = arith.constant 1.000000e+00 : f32
    %117 = vector.broadcast %cst_37 : f32 to vector<8x32xf32>
    %118 = arith.addf %117, %116 : vector<8x32xf32>
    %119 = arith.divf %117, %118 : vector<8x32xf32>
    %120 = vector.extract_strided_slice %104 {offsets = [0, 0], sizes = [8, 32], strides = [1, 1]} : vector<8x128xf32> to vector<8x32xf32>
    %121 = vector.extract_strided_slice %106 {offsets = [0, 0], sizes = [8, 32], strides = [1, 1]} : vector<8x128xf32> to vector<8x32xf32>
    %122 = vector.broadcast %15 : vector<1x32xf32> to vector<8x32xf32>
    %123 = arith.addf %121, %122 : vector<8x32xf32>
    %124 = arith.mulf %113, %123 : vector<8x32xf32>
    %125 = arith.addf %120, %124 : vector<8x32xf32>
    %126 = math.tanh %125 : vector<8x32xf32>
    %cst_38 = arith.constant 1.000000e+00 : f32
    %127 = vector.broadcast %cst_38 : f32 to vector<8x32xf32>
    %128 = arith.subf %127, %119 : vector<8x32xf32>
    %129 = arith.mulf %128, %126 : vector<8x32xf32>
    %130 = arith.mulf %119, %102 : vector<8x32xf32>
    %131 = arith.addf %129, %130 : vector<8x32xf32>
    %c24_39 = arith.constant 24 : index
    %c0_40 = arith.constant 0 : index
    %132 = vector.load %arg13[%c24_39, %c0_40] : memref<64x32xf32, #tpu.memory_space<vmem>>, vector<8x32xf32>
    tpu.vector_store %arg13[%c24_39, %c0_40], %131 {strides = array<i32>} : memref<64x32xf32, #tpu.memory_space<vmem>>, vector<8x32xf32>,
    %c32 = arith.constant 32 : index
    %c0_41 = arith.constant 0 : index
    %133 = vector.load %arg12[%c32, %c0_41] : memref<64x128xf32, #tpu.memory_space<vmem>>, vector<8x128xf32>
    %134 = arith.truncf %131 : vector<8x32xf32> to vector<8x32xbf16>
    %cst_42 = arith.constant dense<0.000000e+00> : vector<8x128xf32>
    %135 = tpu.matmul %134, %9, %cst_42 {dimension_numbers = #tpu.dot_dimension_numbers<[1], [0], [0], [1], [0, 0, 1, 1], [], []>} : vector<8x32xbf16>, vector<32x128xbf16>, vector<8x128xf32> -> vector<8x128xf32>
    %136 = arith.addf %133, %135 : vector<8x128xf32>
    %137 = vector.extract_strided_slice %136 {offsets = [0, 32], sizes = [8, 32], strides = [1, 1]} : vector<8x128xf32> to vector<8x32xf32>
    %138 = arith.negf %137 : vector<8x32xf32>
    %139 = math.exp %138 : vector<8x32xf32>
    %cst_43 = arith.constant 1.000000e+00 : f32
    %140 = vector.broadcast %cst_43 : f32 to vector<8x32xf32>
    %141 = arith.addf %140, %139 : vector<8x32xf32>
    %142 = arith.divf %140, %141 : vector<8x32xf32>
    %143 = vector.extract_strided_slice %136 {offsets = [0, 64], sizes = [8, 32], strides = [1, 1]} : vector<8x128xf32> to vector<8x32xf32>
    %144 = arith.negf %143 : vector<8x32xf32>
    %145 = math.exp %144 : vector<8x32xf32>
    %cst_44 = arith.constant 1.000000e+00 : f32
    %146 = vector.broadcast %cst_44 : f32 to vector<8x32xf32>
    %147 = arith.addf %146, %145 : vector<8x32xf32>
    %148 = arith.divf %146, %147 : vector<8x32xf32>
    %149 = vector.extract_strided_slice %133 {offsets = [0, 0], sizes = [8, 32], strides = [1, 1]} : vector<8x128xf32> to vector<8x32xf32>
    %150 = vector.extract_strided_slice %135 {offsets = [0, 0], sizes = [8, 32], strides = [1, 1]} : vector<8x128xf32> to vector<8x32xf32>
    %151 = vector.broadcast %15 : vector<1x32xf32> to vector<8x32xf32>
    %152 = arith.addf %150, %151 : vector<8x32xf32>
    %153 = arith.mulf %142, %152 : vector<8x32xf32>
    %154 = arith.addf %149, %153 : vector<8x32xf32>
    %155 = math.tanh %154 : vector<8x32xf32>
    %cst_45 = arith.constant 1.000000e+00 : f32
    %156 = vector.broadcast %cst_45 : f32 to vector<8x32xf32>
    %157 = arith.subf %156, %148 : vector<8x32xf32>
    %158 = arith.mulf %157, %155 : vector<8x32xf32>
    %159 = arith.mulf %148, %131 : vector<8x32xf32>
    %160 = arith.addf %158, %159 : vector<8x32xf32>
    %c32_46 = arith.constant 32 : index
    %c0_47 = arith.constant 0 : index
    %161 = vector.load %arg13[%c32_46, %c0_47] : memref<64x32xf32, #tpu.memory_space<vmem>>, vector<8x32xf32>
    tpu.vector_store %arg13[%c32_46, %c0_47], %160 {strides = array<i32>} : memref<64x32xf32, #tpu.memory_space<vmem>>, vector<8x32xf32>,
    %c40 = arith.constant 40 : index
    %c0_48 = arith.constant 0 : index
    %162 = vector.load %arg12[%c40, %c0_48] : memref<64x128xf32, #tpu.memory_space<vmem>>, vector<8x128xf32>
    %163 = arith.truncf %160 : vector<8x32xf32> to vector<8x32xbf16>
    %cst_49 = arith.constant dense<0.000000e+00> : vector<8x128xf32>
    %164 = tpu.matmul %163, %9, %cst_49 {dimension_numbers = #tpu.dot_dimension_numbers<[1], [0], [0], [1], [0, 0, 1, 1], [], []>} : vector<8x32xbf16>, vector<32x128xbf16>, vector<8x128xf32> -> vector<8x128xf32>
    %165 = arith.addf %162, %164 : vector<8x128xf32>
    %166 = vector.extract_strided_slice %165 {offsets = [0, 32], sizes = [8, 32], strides = [1, 1]} : vector<8x128xf32> to vector<8x32xf32>
    %167 = arith.negf %166 : vector<8x32xf32>
    %168 = math.exp %167 : vector<8x32xf32>
    %cst_50 = arith.constant 1.000000e+00 : f32
    %169 = vector.broadcast %cst_50 : f32 to vector<8x32xf32>
    %170 = arith.addf %169, %168 : vector<8x32xf32>
    %171 = arith.divf %169, %170 : vector<8x32xf32>
    %172 = vector.extract_strided_slice %165 {offsets = [0, 64], sizes = [8, 32], strides = [1, 1]} : vector<8x128xf32> to vector<8x32xf32>
    %173 = arith.negf %172 : vector<8x32xf32>
    %174 = math.exp %173 : vector<8x32xf32>
    %cst_51 = arith.constant 1.000000e+00 : f32
    %175 = vector.broadcast %cst_51 : f32 to vector<8x32xf32>
    %176 = arith.addf %175, %174 : vector<8x32xf32>
    %177 = arith.divf %175, %176 : vector<8x32xf32>
    %178 = vector.extract_strided_slice %162 {offsets = [0, 0], sizes = [8, 32], strides = [1, 1]} : vector<8x128xf32> to vector<8x32xf32>
    %179 = vector.extract_strided_slice %164 {offsets = [0, 0], sizes = [8, 32], strides = [1, 1]} : vector<8x128xf32> to vector<8x32xf32>
    %180 = vector.broadcast %15 : vector<1x32xf32> to vector<8x32xf32>
    %181 = arith.addf %179, %180 : vector<8x32xf32>
    %182 = arith.mulf %171, %181 : vector<8x32xf32>
    %183 = arith.addf %178, %182 : vector<8x32xf32>
    %184 = math.tanh %183 : vector<8x32xf32>
    %cst_52 = arith.constant 1.000000e+00 : f32
    %185 = vector.broadcast %cst_52 : f32 to vector<8x32xf32>
    %186 = arith.subf %185, %177 : vector<8x32xf32>
    %187 = arith.mulf %186, %184 : vector<8x32xf32>
    %188 = arith.mulf %177, %160 : vector<8x32xf32>
    %189 = arith.addf %187, %188 : vector<8x32xf32>
    %c40_53 = arith.constant 40 : index
    %c0_54 = arith.constant 0 : index
    %190 = vector.load %arg13[%c40_53, %c0_54] : memref<64x32xf32, #tpu.memory_space<vmem>>, vector<8x32xf32>
    tpu.vector_store %arg13[%c40_53, %c0_54], %189 {strides = array<i32>} : memref<64x32xf32, #tpu.memory_space<vmem>>, vector<8x32xf32>,
    %c48 = arith.constant 48 : index
    %c0_55 = arith.constant 0 : index
    %191 = vector.load %arg12[%c48, %c0_55] : memref<64x128xf32, #tpu.memory_space<vmem>>, vector<8x128xf32>
    %192 = arith.truncf %189 : vector<8x32xf32> to vector<8x32xbf16>
    %cst_56 = arith.constant dense<0.000000e+00> : vector<8x128xf32>
    %193 = tpu.matmul %192, %9, %cst_56 {dimension_numbers = #tpu.dot_dimension_numbers<[1], [0], [0], [1], [0, 0, 1, 1], [], []>} : vector<8x32xbf16>, vector<32x128xbf16>, vector<8x128xf32> -> vector<8x128xf32>
    %194 = arith.addf %191, %193 : vector<8x128xf32>
    %195 = vector.extract_strided_slice %194 {offsets = [0, 32], sizes = [8, 32], strides = [1, 1]} : vector<8x128xf32> to vector<8x32xf32>
    %196 = arith.negf %195 : vector<8x32xf32>
    %197 = math.exp %196 : vector<8x32xf32>
    %cst_57 = arith.constant 1.000000e+00 : f32
    %198 = vector.broadcast %cst_57 : f32 to vector<8x32xf32>
    %199 = arith.addf %198, %197 : vector<8x32xf32>
    %200 = arith.divf %198, %199 : vector<8x32xf32>
    %201 = vector.extract_strided_slice %194 {offsets = [0, 64], sizes = [8, 32], strides = [1, 1]} : vector<8x128xf32> to vector<8x32xf32>
    %202 = arith.negf %201 : vector<8x32xf32>
    %203 = math.exp %202 : vector<8x32xf32>
    %cst_58 = arith.constant 1.000000e+00 : f32
    %204 = vector.broadcast %cst_58 : f32 to vector<8x32xf32>
    %205 = arith.addf %204, %203 : vector<8x32xf32>
    %206 = arith.divf %204, %205 : vector<8x32xf32>
    %207 = vector.extract_strided_slice %191 {offsets = [0, 0], sizes = [8, 32], strides = [1, 1]} : vector<8x128xf32> to vector<8x32xf32>
    %208 = vector.extract_strided_slice %193 {offsets = [0, 0], sizes = [8, 32], strides = [1, 1]} : vector<8x128xf32> to vector<8x32xf32>
    %209 = vector.broadcast %15 : vector<1x32xf32> to vector<8x32xf32>
    %210 = arith.addf %208, %209 : vector<8x32xf32>
    %211 = arith.mulf %200, %210 : vector<8x32xf32>
    %212 = arith.addf %207, %211 : vector<8x32xf32>
    %213 = math.tanh %212 : vector<8x32xf32>
    %cst_59 = arith.constant 1.000000e+00 : f32
    %214 = vector.broadcast %cst_59 : f32 to vector<8x32xf32>
    %215 = arith.subf %214, %206 : vector<8x32xf32>
    %216 = arith.mulf %215, %213 : vector<8x32xf32>
    %217 = arith.mulf %206, %189 : vector<8x32xf32>
    %218 = arith.addf %216, %217 : vector<8x32xf32>
    %c48_60 = arith.constant 48 : index
    %c0_61 = arith.constant 0 : index
    %219 = vector.load %arg13[%c48_60, %c0_61] : memref<64x32xf32, #tpu.memory_space<vmem>>, vector<8x32xf32>
    tpu.vector_store %arg13[%c48_60, %c0_61], %218 {strides = array<i32>} : memref<64x32xf32, #tpu.memory_space<vmem>>, vector<8x32xf32>,
    %c56 = arith.constant 56 : index
    %c0_62 = arith.constant 0 : index
    %220 = vector.load %arg12[%c56, %c0_62] : memref<64x128xf32, #tpu.memory_space<vmem>>, vector<8x128xf32>
    %221 = arith.truncf %218 : vector<8x32xf32> to vector<8x32xbf16>
    %cst_63 = arith.constant dense<0.000000e+00> : vector<8x128xf32>
    %222 = tpu.matmul %221, %9, %cst_63 {dimension_numbers = #tpu.dot_dimension_numbers<[1], [0], [0], [1], [0, 0, 1, 1], [], []>} : vector<8x32xbf16>, vector<32x128xbf16>, vector<8x128xf32> -> vector<8x128xf32>
    %223 = arith.addf %220, %222 : vector<8x128xf32>
    %224 = vector.extract_strided_slice %223 {offsets = [0, 32], sizes = [8, 32], strides = [1, 1]} : vector<8x128xf32> to vector<8x32xf32>
    %225 = arith.negf %224 : vector<8x32xf32>
    %226 = math.exp %225 : vector<8x32xf32>
    %cst_64 = arith.constant 1.000000e+00 : f32
    %227 = vector.broadcast %cst_64 : f32 to vector<8x32xf32>
    %228 = arith.addf %227, %226 : vector<8x32xf32>
    %229 = arith.divf %227, %228 : vector<8x32xf32>
    %230 = vector.extract_strided_slice %223 {offsets = [0, 64], sizes = [8, 32], strides = [1, 1]} : vector<8x128xf32> to vector<8x32xf32>
    %231 = arith.negf %230 : vector<8x32xf32>
    %232 = math.exp %231 : vector<8x32xf32>
    %cst_65 = arith.constant 1.000000e+00 : f32
    %233 = vector.broadcast %cst_65 : f32 to vector<8x32xf32>
    %234 = arith.addf %233, %232 : vector<8x32xf32>
    %235 = arith.divf %233, %234 : vector<8x32xf32>
    %236 = vector.extract_strided_slice %220 {offsets = [0, 0], sizes = [8, 32], strides = [1, 1]} : vector<8x128xf32> to vector<8x32xf32>
    %237 = vector.extract_strided_slice %222 {offsets = [0, 0], sizes = [8, 32], strides = [1, 1]} : vector<8x128xf32> to vector<8x32xf32>
    %238 = vector.broadcast %15 : vector<1x32xf32> to vector<8x32xf32>
    %239 = arith.addf %237, %238 : vector<8x32xf32>
    %240 = arith.mulf %229, %239 : vector<8x32xf32>
    %241 = arith.addf %236, %240 : vector<8x32xf32>
    %242 = math.tanh %241 : vector<8x32xf32>
    %cst_66 = arith.constant 1.000000e+00 : f32
    %243 = vector.broadcast %cst_66 : f32 to vector<8x32xf32>
    %244 = arith.subf %243, %235 : vector<8x32xf32>
    %245 = arith.mulf %244, %242 : vector<8x32xf32>
    %246 = arith.mulf %235, %218 : vector<8x32xf32>
    %247 = arith.addf %245, %246 : vector<8x32xf32>
    %c56_67 = arith.constant 56 : index
    %c0_68 = arith.constant 0 : index
    %248 = vector.load %arg13[%c56_67, %c0_68] : memref<64x32xf32, #tpu.memory_space<vmem>>, vector<8x32xf32>
    tpu.vector_store %arg13[%c56_67, %c0_68], %247 {strides = array<i32>} : memref<64x32xf32, #tpu.memory_space<vmem>>, vector<8x32xf32>,
    %c0_i32_69 = arith.constant 0 : i32
    %249 = tpu.memref_slice %arg18[%c0_i32_69] : memref<3x!tpu.dma_semaphore, #tpu.memory_space<semaphore_mem>> -> memref<1x!tpu.dma_semaphore, #tpu.memory_space<semaphore_mem>>
    %250 = tpu.memref_squeeze %249 : memref<1x!tpu.dma_semaphore, #tpu.memory_space<semaphore_mem>> -> memref<!tpu.dma_semaphore, #tpu.memory_space<semaphore_mem>>
    tpu.wait_dma2 semaphore(%250 : memref<!tpu.dma_semaphore, #tpu.memory_space<semaphore_mem>>) src(%arg8 : memref<32x128xbf16, #tpu.memory_space<any>>) dst(%arg15 : memref<32x128xbf16, #tpu.memory_space<vmem>>)
    %c1_i32_70 = arith.constant 1 : i32
    %251 = tpu.memref_slice %arg18[%c1_i32_70] : memref<3x!tpu.dma_semaphore, #tpu.memory_space<semaphore_mem>> -> memref<1x!tpu.dma_semaphore, #tpu.memory_space<semaphore_mem>>
    %252 = tpu.memref_squeeze %251 : memref<1x!tpu.dma_semaphore, #tpu.memory_space<semaphore_mem>> -> memref<!tpu.dma_semaphore, #tpu.memory_space<semaphore_mem>>
    tpu.wait_dma2 semaphore(%252 : memref<!tpu.dma_semaphore, #tpu.memory_space<semaphore_mem>>) src(%arg9 : memref<32x128xbf16, #tpu.memory_space<any>>) dst(%arg16 : memref<32x128xbf16, #tpu.memory_space<vmem>>)
    %c0_71 = arith.constant 0 : index
    %c0_72 = arith.constant 0 : index
    %253 = vector.load %arg13[%c0_71, %c0_72] : memref<64x32xf32, #tpu.memory_space<vmem>>, vector<64x32xf32>
    %254 = arith.truncf %253 : vector<64x32xf32> to vector<64x32xbf16>
    %c0_73 = arith.constant 0 : index
    %c0_74 = arith.constant 0 : index
    %255 = vector.load %arg15[%c0_73, %c0_74] : memref<32x128xbf16, #tpu.memory_space<vmem>>, vector<32x128xbf16>
    %c0_75 = arith.constant 0 : index
    %c0_76 = arith.constant 0 : index
    %256 = vector.load %arg16[%c0_75, %c0_76] : memref<32x128xbf16, #tpu.memory_space<vmem>>, vector<32x128xbf16>
    %cst_77 = arith.constant dense<0.000000e+00> : vector<64x128xf32>
    %257 = tpu.matmul %254, %255, %cst_77 {dimension_numbers = #tpu.dot_dimension_numbers<[1], [0], [0], [1], [0, 0, 1, 1], [], []>} : vector<64x32xbf16>, vector<32x128xbf16>, vector<64x128xf32> -> vector<64x128xf32>
    %c0_78 = arith.constant 0 : index
    %c0_79 = arith.constant 0 : index
    %258 = vector.load %arg5[%c0_78, %c0_79] : memref<1x128xf32, #tpu.memory_space<vmem>>, vector<1x128xf32>
    %259 = vector.broadcast %258 : vector<1x128xf32> to vector<64x128xf32>
    %260 = arith.addf %257, %259 : vector<64x128xf32>
    %c0_80 = arith.constant 0 : index
    %c0_81 = arith.constant 0 : index
    %261 = vector.load %arg12[%c0_80, %c0_81] : memref<64x128xf32, #tpu.memory_space<vmem>>, vector<64x128xf32>
    tpu.vector_store %arg12[%c0_80, %c0_81], %260 {strides = array<i32>} : memref<64x128xf32, #tpu.memory_space<vmem>>, vector<64x128xf32>,
    %c0_82 = arith.constant 0 : index
    %c0_83 = arith.constant 0 : index
    %262 = vector.load %arg6[%c0_82, %c0_83] : memref<1x32xf32, #tpu.memory_space<vmem>>, vector<1x32xf32>
    %cst_84 = arith.constant 0.000000e+00 : f32
    %263 = vector.broadcast %cst_84 : f32 to vector<8x32xf32>
    %c0_85 = arith.constant 0 : index
    %c0_86 = arith.constant 0 : index
    %264 = vector.load %arg12[%c0_85, %c0_86] : memref<64x128xf32, #tpu.memory_space<vmem>>, vector<8x128xf32>
    %265 = arith.truncf %263 : vector<8x32xf32> to vector<8x32xbf16>
    %cst_87 = arith.constant dense<0.000000e+00> : vector<8x128xf32>
    %266 = tpu.matmul %265, %256, %cst_87 {dimension_numbers = #tpu.dot_dimension_numbers<[1], [0], [0], [1], [0, 0, 1, 1], [], []>} : vector<8x32xbf16>, vector<32x128xbf16>, vector<8x128xf32> -> vector<8x128xf32>
    %267 = arith.addf %264, %266 : vector<8x128xf32>
    %268 = vector.extract_strided_slice %267 {offsets = [0, 32], sizes = [8, 32], strides = [1, 1]} : vector<8x128xf32> to vector<8x32xf32>
    %269 = arith.negf %268 : vector<8x32xf32>
    %270 = math.exp %269 : vector<8x32xf32>
    %cst_88 = arith.constant 1.000000e+00 : f32
    %271 = vector.broadcast %cst_88 : f32 to vector<8x32xf32>
    %272 = arith.addf %271, %270 : vector<8x32xf32>
    %273 = arith.divf %271, %272 : vector<8x32xf32>
    %274 = vector.extract_strided_slice %267 {offsets = [0, 64], sizes = [8, 32], strides = [1, 1]} : vector<8x128xf32> to vector<8x32xf32>
    %275 = arith.negf %274 : vector<8x32xf32>
    %276 = math.exp %275 : vector<8x32xf32>
    %cst_89 = arith.constant 1.000000e+00 : f32
    %277 = vector.broadcast %cst_89 : f32 to vector<8x32xf32>
    %278 = arith.addf %277, %276 : vector<8x32xf32>
    %279 = arith.divf %277, %278 : vector<8x32xf32>
    %280 = vector.extract_strided_slice %264 {offsets = [0, 0], sizes = [8, 32], strides = [1, 1]} : vector<8x128xf32> to vector<8x32xf32>
    %281 = vector.extract_strided_slice %266 {offsets = [0, 0], sizes = [8, 32], strides = [1, 1]} : vector<8x128xf32> to vector<8x32xf32>
    %282 = vector.broadcast %262 : vector<1x32xf32> to vector<8x32xf32>
    %283 = arith.addf %281, %282 : vector<8x32xf32>
    %284 = arith.mulf %273, %283 : vector<8x32xf32>
    %285 = arith.addf %280, %284 : vector<8x32xf32>
    %286 = math.tanh %285 : vector<8x32xf32>
    %cst_90 = arith.constant 1.000000e+00 : f32
    %287 = vector.broadcast %cst_90 : f32 to vector<8x32xf32>
    %288 = arith.subf %287, %279 : vector<8x32xf32>
    %289 = arith.mulf %288, %286 : vector<8x32xf32>
    %290 = arith.mulf %279, %263 : vector<8x32xf32>
    %291 = arith.addf %289, %290 : vector<8x32xf32>
    %c0_91 = arith.constant 0 : index
    %c0_92 = arith.constant 0 : index
    %292 = vector.load %arg13[%c0_91, %c0_92] : memref<64x32xf32, #tpu.memory_space<vmem>>, vector<8x32xf32>
    tpu.vector_store %arg13[%c0_91, %c0_92], %291 {strides = array<i32>} : memref<64x32xf32, #tpu.memory_space<vmem>>, vector<8x32xf32>,
    %c8_93 = arith.constant 8 : index
    %c0_94 = arith.constant 0 : index
    %293 = vector.load %arg12[%c8_93, %c0_94] : memref<64x128xf32, #tpu.memory_space<vmem>>, vector<8x128xf32>
    %294 = arith.truncf %291 : vector<8x32xf32> to vector<8x32xbf16>
    %cst_95 = arith.constant dense<0.000000e+00> : vector<8x128xf32>
    %295 = tpu.matmul %294, %256, %cst_95 {dimension_numbers = #tpu.dot_dimension_numbers<[1], [0], [0], [1], [0, 0, 1, 1], [], []>} : vector<8x32xbf16>, vector<32x128xbf16>, vector<8x128xf32> -> vector<8x128xf32>
    %296 = arith.addf %293, %295 : vector<8x128xf32>
    %297 = vector.extract_strided_slice %296 {offsets = [0, 32], sizes = [8, 32], strides = [1, 1]} : vector<8x128xf32> to vector<8x32xf32>
    %298 = arith.negf %297 : vector<8x32xf32>
    %299 = math.exp %298 : vector<8x32xf32>
    %cst_96 = arith.constant 1.000000e+00 : f32
    %300 = vector.broadcast %cst_96 : f32 to vector<8x32xf32>
    %301 = arith.addf %300, %299 : vector<8x32xf32>
    %302 = arith.divf %300, %301 : vector<8x32xf32>
    %303 = vector.extract_strided_slice %296 {offsets = [0, 64], sizes = [8, 32], strides = [1, 1]} : vector<8x128xf32> to vector<8x32xf32>
    %304 = arith.negf %303 : vector<8x32xf32>
    %305 = math.exp %304 : vector<8x32xf32>
    %cst_97 = arith.constant 1.000000e+00 : f32
    %306 = vector.broadcast %cst_97 : f32 to vector<8x32xf32>
    %307 = arith.addf %306, %305 : vector<8x32xf32>
    %308 = arith.divf %306, %307 : vector<8x32xf32>
    %309 = vector.extract_strided_slice %293 {offsets = [0, 0], sizes = [8, 32], strides = [1, 1]} : vector<8x128xf32> to vector<8x32xf32>
    %310 = vector.extract_strided_slice %295 {offsets = [0, 0], sizes = [8, 32], strides = [1, 1]} : vector<8x128xf32> to vector<8x32xf32>
    %311 = vector.broadcast %262 : vector<1x32xf32> to vector<8x32xf32>
    %312 = arith.addf %310, %311 : vector<8x32xf32>
    %313 = arith.mulf %302, %312 : vector<8x32xf32>
    %314 = arith.addf %309, %313 : vector<8x32xf32>
    %315 = math.tanh %314 : vector<8x32xf32>
    %cst_98 = arith.constant 1.000000e+00 : f32
    %316 = vector.broadcast %cst_98 : f32 to vector<8x32xf32>
    %317 = arith.subf %316, %308 : vector<8x32xf32>
    %318 = arith.mulf %317, %315 : vector<8x32xf32>
    %319 = arith.mulf %308, %291 : vector<8x32xf32>
    %320 = arith.addf %318, %319 : vector<8x32xf32>
    %c8_99 = arith.constant 8 : index
    %c0_100 = arith.constant 0 : index
    %321 = vector.load %arg13[%c8_99, %c0_100] : memref<64x32xf32, #tpu.memory_space<vmem>>, vector<8x32xf32>
    tpu.vector_store %arg13[%c8_99, %c0_100], %320 {strides = array<i32>} : memref<64x32xf32, #tpu.memory_space<vmem>>, vector<8x32xf32>,
    %c16_101 = arith.constant 16 : index
    %c0_102 = arith.constant 0 : index
    %322 = vector.load %arg12[%c16_101, %c0_102] : memref<64x128xf32, #tpu.memory_space<vmem>>, vector<8x128xf32>
    %323 = arith.truncf %320 : vector<8x32xf32> to vector<8x32xbf16>
    %cst_103 = arith.constant dense<0.000000e+00> : vector<8x128xf32>
    %324 = tpu.matmul %323, %256, %cst_103 {dimension_numbers = #tpu.dot_dimension_numbers<[1], [0], [0], [1], [0, 0, 1, 1], [], []>} : vector<8x32xbf16>, vector<32x128xbf16>, vector<8x128xf32> -> vector<8x128xf32>
    %325 = arith.addf %322, %324 : vector<8x128xf32>
    %326 = vector.extract_strided_slice %325 {offsets = [0, 32], sizes = [8, 32], strides = [1, 1]} : vector<8x128xf32> to vector<8x32xf32>
    %327 = arith.negf %326 : vector<8x32xf32>
    %328 = math.exp %327 : vector<8x32xf32>
    %cst_104 = arith.constant 1.000000e+00 : f32
    %329 = vector.broadcast %cst_104 : f32 to vector<8x32xf32>
    %330 = arith.addf %329, %328 : vector<8x32xf32>
    %331 = arith.divf %329, %330 : vector<8x32xf32>
    %332 = vector.extract_strided_slice %325 {offsets = [0, 64], sizes = [8, 32], strides = [1, 1]} : vector<8x128xf32> to vector<8x32xf32>
    %333 = arith.negf %332 : vector<8x32xf32>
    %334 = math.exp %333 : vector<8x32xf32>
    %cst_105 = arith.constant 1.000000e+00 : f32
    %335 = vector.broadcast %cst_105 : f32 to vector<8x32xf32>
    %336 = arith.addf %335, %334 : vector<8x32xf32>
    %337 = arith.divf %335, %336 : vector<8x32xf32>
    %338 = vector.extract_strided_slice %322 {offsets = [0, 0], sizes = [8, 32], strides = [1, 1]} : vector<8x128xf32> to vector<8x32xf32>
    %339 = vector.extract_strided_slice %324 {offsets = [0, 0], sizes = [8, 32], strides = [1, 1]} : vector<8x128xf32> to vector<8x32xf32>
    %340 = vector.broadcast %262 : vector<1x32xf32> to vector<8x32xf32>
    %341 = arith.addf %339, %340 : vector<8x32xf32>
    %342 = arith.mulf %331, %341 : vector<8x32xf32>
    %343 = arith.addf %338, %342 : vector<8x32xf32>
    %344 = math.tanh %343 : vector<8x32xf32>
    %cst_106 = arith.constant 1.000000e+00 : f32
    %345 = vector.broadcast %cst_106 : f32 to vector<8x32xf32>
    %346 = arith.subf %345, %337 : vector<8x32xf32>
    %347 = arith.mulf %346, %344 : vector<8x32xf32>
    %348 = arith.mulf %337, %320 : vector<8x32xf32>
    %349 = arith.addf %347, %348 : vector<8x32xf32>
    %c16_107 = arith.constant 16 : index
    %c0_108 = arith.constant 0 : index
    %350 = vector.load %arg13[%c16_107, %c0_108] : memref<64x32xf32, #tpu.memory_space<vmem>>, vector<8x32xf32>
    tpu.vector_store %arg13[%c16_107, %c0_108], %349 {strides = array<i32>} : memref<64x32xf32, #tpu.memory_space<vmem>>, vector<8x32xf32>,
    %c24_109 = arith.constant 24 : index
    %c0_110 = arith.constant 0 : index
    %351 = vector.load %arg12[%c24_109, %c0_110] : memref<64x128xf32, #tpu.memory_space<vmem>>, vector<8x128xf32>
    %352 = arith.truncf %349 : vector<8x32xf32> to vector<8x32xbf16>
    %cst_111 = arith.constant dense<0.000000e+00> : vector<8x128xf32>
    %353 = tpu.matmul %352, %256, %cst_111 {dimension_numbers = #tpu.dot_dimension_numbers<[1], [0], [0], [1], [0, 0, 1, 1], [], []>} : vector<8x32xbf16>, vector<32x128xbf16>, vector<8x128xf32> -> vector<8x128xf32>
    %354 = arith.addf %351, %353 : vector<8x128xf32>
    %355 = vector.extract_strided_slice %354 {offsets = [0, 32], sizes = [8, 32], strides = [1, 1]} : vector<8x128xf32> to vector<8x32xf32>
    %356 = arith.negf %355 : vector<8x32xf32>
    %357 = math.exp %356 : vector<8x32xf32>
    %cst_112 = arith.constant 1.000000e+00 : f32
    %358 = vector.broadcast %cst_112 : f32 to vector<8x32xf32>
    %359 = arith.addf %358, %357 : vector<8x32xf32>
    %360 = arith.divf %358, %359 : vector<8x32xf32>
    %361 = vector.extract_strided_slice %354 {offsets = [0, 64], sizes = [8, 32], strides = [1, 1]} : vector<8x128xf32> to vector<8x32xf32>
    %362 = arith.negf %361 : vector<8x32xf32>
    %363 = math.exp %362 : vector<8x32xf32>
    %cst_113 = arith.constant 1.000000e+00 : f32
    %364 = vector.broadcast %cst_113 : f32 to vector<8x32xf32>
    %365 = arith.addf %364, %363 : vector<8x32xf32>
    %366 = arith.divf %364, %365 : vector<8x32xf32>
    %367 = vector.extract_strided_slice %351 {offsets = [0, 0], sizes = [8, 32], strides = [1, 1]} : vector<8x128xf32> to vector<8x32xf32>
    %368 = vector.extract_strided_slice %353 {offsets = [0, 0], sizes = [8, 32], strides = [1, 1]} : vector<8x128xf32> to vector<8x32xf32>
    %369 = vector.broadcast %262 : vector<1x32xf32> to vector<8x32xf32>
    %370 = arith.addf %368, %369 : vector<8x32xf32>
    %371 = arith.mulf %360, %370 : vector<8x32xf32>
    %372 = arith.addf %367, %371 : vector<8x32xf32>
    %373 = math.tanh %372 : vector<8x32xf32>
    %cst_114 = arith.constant 1.000000e+00 : f32
    %374 = vector.broadcast %cst_114 : f32 to vector<8x32xf32>
    %375 = arith.subf %374, %366 : vector<8x32xf32>
    %376 = arith.mulf %375, %373 : vector<8x32xf32>
    %377 = arith.mulf %366, %349 : vector<8x32xf32>
    %378 = arith.addf %376, %377 : vector<8x32xf32>
    %c24_115 = arith.constant 24 : index
    %c0_116 = arith.constant 0 : index
    %379 = vector.load %arg13[%c24_115, %c0_116] : memref<64x32xf32, #tpu.memory_space<vmem>>, vector<8x32xf32>
    tpu.vector_store %arg13[%c24_115, %c0_116], %378 {strides = array<i32>} : memref<64x32xf32, #tpu.memory_space<vmem>>, vector<8x32xf32>,
    %c32_117 = arith.constant 32 : index
    %c0_118 = arith.constant 0 : index
    %380 = vector.load %arg12[%c32_117, %c0_118] : memref<64x128xf32, #tpu.memory_space<vmem>>, vector<8x128xf32>
    %381 = arith.truncf %378 : vector<8x32xf32> to vector<8x32xbf16>
    %cst_119 = arith.constant dense<0.000000e+00> : vector<8x128xf32>
    %382 = tpu.matmul %381, %256, %cst_119 {dimension_numbers = #tpu.dot_dimension_numbers<[1], [0], [0], [1], [0, 0, 1, 1], [], []>} : vector<8x32xbf16>, vector<32x128xbf16>, vector<8x128xf32> -> vector<8x128xf32>
    %383 = arith.addf %380, %382 : vector<8x128xf32>
    %384 = vector.extract_strided_slice %383 {offsets = [0, 32], sizes = [8, 32], strides = [1, 1]} : vector<8x128xf32> to vector<8x32xf32>
    %385 = arith.negf %384 : vector<8x32xf32>
    %386 = math.exp %385 : vector<8x32xf32>
    %cst_120 = arith.constant 1.000000e+00 : f32
    %387 = vector.broadcast %cst_120 : f32 to vector<8x32xf32>
    %388 = arith.addf %387, %386 : vector<8x32xf32>
    %389 = arith.divf %387, %388 : vector<8x32xf32>
    %390 = vector.extract_strided_slice %383 {offsets = [0, 64], sizes = [8, 32], strides = [1, 1]} : vector<8x128xf32> to vector<8x32xf32>
    %391 = arith.negf %390 : vector<8x32xf32>
    %392 = math.exp %391 : vector<8x32xf32>
    %cst_121 = arith.constant 1.000000e+00 : f32
    %393 = vector.broadcast %cst_121 : f32 to vector<8x32xf32>
    %394 = arith.addf %393, %392 : vector<8x32xf32>
    %395 = arith.divf %393, %394 : vector<8x32xf32>
    %396 = vector.extract_strided_slice %380 {offsets = [0, 0], sizes = [8, 32], strides = [1, 1]} : vector<8x128xf32> to vector<8x32xf32>
    %397 = vector.extract_strided_slice %382 {offsets = [0, 0], sizes = [8, 32], strides = [1, 1]} : vector<8x128xf32> to vector<8x32xf32>
    %398 = vector.broadcast %262 : vector<1x32xf32> to vector<8x32xf32>
    %399 = arith.addf %397, %398 : vector<8x32xf32>
    %400 = arith.mulf %389, %399 : vector<8x32xf32>
    %401 = arith.addf %396, %400 : vector<8x32xf32>
    %402 = math.tanh %401 : vector<8x32xf32>
    %cst_122 = arith.constant 1.000000e+00 : f32
    %403 = vector.broadcast %cst_122 : f32 to vector<8x32xf32>
    %404 = arith.subf %403, %395 : vector<8x32xf32>
    %405 = arith.mulf %404, %402 : vector<8x32xf32>
    %406 = arith.mulf %395, %378 : vector<8x32xf32>
    %407 = arith.addf %405, %406 : vector<8x32xf32>
    %c32_123 = arith.constant 32 : index
    %c0_124 = arith.constant 0 : index
    %408 = vector.load %arg13[%c32_123, %c0_124] : memref<64x32xf32, #tpu.memory_space<vmem>>, vector<8x32xf32>
    tpu.vector_store %arg13[%c32_123, %c0_124], %407 {strides = array<i32>} : memref<64x32xf32, #tpu.memory_space<vmem>>, vector<8x32xf32>,
    %c40_125 = arith.constant 40 : index
    %c0_126 = arith.constant 0 : index
    %409 = vector.load %arg12[%c40_125, %c0_126] : memref<64x128xf32, #tpu.memory_space<vmem>>, vector<8x128xf32>
    %410 = arith.truncf %407 : vector<8x32xf32> to vector<8x32xbf16>
    %cst_127 = arith.constant dense<0.000000e+00> : vector<8x128xf32>
    %411 = tpu.matmul %410, %256, %cst_127 {dimension_numbers = #tpu.dot_dimension_numbers<[1], [0], [0], [1], [0, 0, 1, 1], [], []>} : vector<8x32xbf16>, vector<32x128xbf16>, vector<8x128xf32> -> vector<8x128xf32>
    %412 = arith.addf %409, %411 : vector<8x128xf32>
    %413 = vector.extract_strided_slice %412 {offsets = [0, 32], sizes = [8, 32], strides = [1, 1]} : vector<8x128xf32> to vector<8x32xf32>
    %414 = arith.negf %413 : vector<8x32xf32>
    %415 = math.exp %414 : vector<8x32xf32>
    %cst_128 = arith.constant 1.000000e+00 : f32
    %416 = vector.broadcast %cst_128 : f32 to vector<8x32xf32>
    %417 = arith.addf %416, %415 : vector<8x32xf32>
    %418 = arith.divf %416, %417 : vector<8x32xf32>
    %419 = vector.extract_strided_slice %412 {offsets = [0, 64], sizes = [8, 32], strides = [1, 1]} : vector<8x128xf32> to vector<8x32xf32>
    %420 = arith.negf %419 : vector<8x32xf32>
    %421 = math.exp %420 : vector<8x32xf32>
    %cst_129 = arith.constant 1.000000e+00 : f32
    %422 = vector.broadcast %cst_129 : f32 to vector<8x32xf32>
    %423 = arith.addf %422, %421 : vector<8x32xf32>
    %424 = arith.divf %422, %423 : vector<8x32xf32>
    %425 = vector.extract_strided_slice %409 {offsets = [0, 0], sizes = [8, 32], strides = [1, 1]} : vector<8x128xf32> to vector<8x32xf32>
    %426 = vector.extract_strided_slice %411 {offsets = [0, 0], sizes = [8, 32], strides = [1, 1]} : vector<8x128xf32> to vector<8x32xf32>
    %427 = vector.broadcast %262 : vector<1x32xf32> to vector<8x32xf32>
    %428 = arith.addf %426, %427 : vector<8x32xf32>
    %429 = arith.mulf %418, %428 : vector<8x32xf32>
    %430 = arith.addf %425, %429 : vector<8x32xf32>
    %431 = math.tanh %430 : vector<8x32xf32>
    %cst_130 = arith.constant 1.000000e+00 : f32
    %432 = vector.broadcast %cst_130 : f32 to vector<8x32xf32>
    %433 = arith.subf %432, %424 : vector<8x32xf32>
    %434 = arith.mulf %433, %431 : vector<8x32xf32>
    %435 = arith.mulf %424, %407 : vector<8x32xf32>
    %436 = arith.addf %434, %435 : vector<8x32xf32>
    %c40_131 = arith.constant 40 : index
    %c0_132 = arith.constant 0 : index
    %437 = vector.load %arg13[%c40_131, %c0_132] : memref<64x32xf32, #tpu.memory_space<vmem>>, vector<8x32xf32>
    tpu.vector_store %arg13[%c40_131, %c0_132], %436 {strides = array<i32>} : memref<64x32xf32, #tpu.memory_space<vmem>>, vector<8x32xf32>,
    %c48_133 = arith.constant 48 : index
    %c0_134 = arith.constant 0 : index
    %438 = vector.load %arg12[%c48_133, %c0_134] : memref<64x128xf32, #tpu.memory_space<vmem>>, vector<8x128xf32>
    %439 = arith.truncf %436 : vector<8x32xf32> to vector<8x32xbf16>
    %cst_135 = arith.constant dense<0.000000e+00> : vector<8x128xf32>
    %440 = tpu.matmul %439, %256, %cst_135 {dimension_numbers = #tpu.dot_dimension_numbers<[1], [0], [0], [1], [0, 0, 1, 1], [], []>} : vector<8x32xbf16>, vector<32x128xbf16>, vector<8x128xf32> -> vector<8x128xf32>
    %441 = arith.addf %438, %440 : vector<8x128xf32>
    %442 = vector.extract_strided_slice %441 {offsets = [0, 32], sizes = [8, 32], strides = [1, 1]} : vector<8x128xf32> to vector<8x32xf32>
    %443 = arith.negf %442 : vector<8x32xf32>
    %444 = math.exp %443 : vector<8x32xf32>
    %cst_136 = arith.constant 1.000000e+00 : f32
    %445 = vector.broadcast %cst_136 : f32 to vector<8x32xf32>
    %446 = arith.addf %445, %444 : vector<8x32xf32>
    %447 = arith.divf %445, %446 : vector<8x32xf32>
    %448 = vector.extract_strided_slice %441 {offsets = [0, 64], sizes = [8, 32], strides = [1, 1]} : vector<8x128xf32> to vector<8x32xf32>
    %449 = arith.negf %448 : vector<8x32xf32>
    %450 = math.exp %449 : vector<8x32xf32>
    %cst_137 = arith.constant 1.000000e+00 : f32
    %451 = vector.broadcast %cst_137 : f32 to vector<8x32xf32>
    %452 = arith.addf %451, %450 : vector<8x32xf32>
    %453 = arith.divf %451, %452 : vector<8x32xf32>
    %454 = vector.extract_strided_slice %438 {offsets = [0, 0], sizes = [8, 32], strides = [1, 1]} : vector<8x128xf32> to vector<8x32xf32>
    %455 = vector.extract_strided_slice %440 {offsets = [0, 0], sizes = [8, 32], strides = [1, 1]} : vector<8x128xf32> to vector<8x32xf32>
    %456 = vector.broadcast %262 : vector<1x32xf32> to vector<8x32xf32>
    %457 = arith.addf %455, %456 : vector<8x32xf32>
    %458 = arith.mulf %447, %457 : vector<8x32xf32>
    %459 = arith.addf %454, %458 : vector<8x32xf32>
    %460 = math.tanh %459 : vector<8x32xf32>
    %cst_138 = arith.constant 1.000000e+00 : f32
    %461 = vector.broadcast %cst_138 : f32 to vector<8x32xf32>
    %462 = arith.subf %461, %453 : vector<8x32xf32>
    %463 = arith.mulf %462, %460 : vector<8x32xf32>
    %464 = arith.mulf %453, %436 : vector<8x32xf32>
    %465 = arith.addf %463, %464 : vector<8x32xf32>
    %c48_139 = arith.constant 48 : index
    %c0_140 = arith.constant 0 : index
    %466 = vector.load %arg13[%c48_139, %c0_140] : memref<64x32xf32, #tpu.memory_space<vmem>>, vector<8x32xf32>
    tpu.vector_store %arg13[%c48_139, %c0_140], %465 {strides = array<i32>} : memref<64x32xf32, #tpu.memory_space<vmem>>, vector<8x32xf32>,
    %c56_141 = arith.constant 56 : index
    %c0_142 = arith.constant 0 : index
    %467 = vector.load %arg12[%c56_141, %c0_142] : memref<64x128xf32, #tpu.memory_space<vmem>>, vector<8x128xf32>
    %468 = arith.truncf %465 : vector<8x32xf32> to vector<8x32xbf16>
    %cst_143 = arith.constant dense<0.000000e+00> : vector<8x128xf32>
    %469 = tpu.matmul %468, %256, %cst_143 {dimension_numbers = #tpu.dot_dimension_numbers<[1], [0], [0], [1], [0, 0, 1, 1], [], []>} : vector<8x32xbf16>, vector<32x128xbf16>, vector<8x128xf32> -> vector<8x128xf32>
    %470 = arith.addf %467, %469 : vector<8x128xf32>
    %471 = vector.extract_strided_slice %470 {offsets = [0, 32], sizes = [8, 32], strides = [1, 1]} : vector<8x128xf32> to vector<8x32xf32>
    %472 = arith.negf %471 : vector<8x32xf32>
    %473 = math.exp %472 : vector<8x32xf32>
    %cst_144 = arith.constant 1.000000e+00 : f32
    %474 = vector.broadcast %cst_144 : f32 to vector<8x32xf32>
    %475 = arith.addf %474, %473 : vector<8x32xf32>
    %476 = arith.divf %474, %475 : vector<8x32xf32>
    %477 = vector.extract_strided_slice %470 {offsets = [0, 64], sizes = [8, 32], strides = [1, 1]} : vector<8x128xf32> to vector<8x32xf32>
    %478 = arith.negf %477 : vector<8x32xf32>
    %479 = math.exp %478 : vector<8x32xf32>
    %cst_145 = arith.constant 1.000000e+00 : f32
    %480 = vector.broadcast %cst_145 : f32 to vector<8x32xf32>
    %481 = arith.addf %480, %479 : vector<8x32xf32>
    %482 = arith.divf %480, %481 : vector<8x32xf32>
    %483 = vector.extract_strided_slice %467 {offsets = [0, 0], sizes = [8, 32], strides = [1, 1]} : vector<8x128xf32> to vector<8x32xf32>
    %484 = vector.extract_strided_slice %469 {offsets = [0, 0], sizes = [8, 32], strides = [1, 1]} : vector<8x128xf32> to vector<8x32xf32>
    %485 = vector.broadcast %262 : vector<1x32xf32> to vector<8x32xf32>
    %486 = arith.addf %484, %485 : vector<8x32xf32>
    %487 = arith.mulf %476, %486 : vector<8x32xf32>
    %488 = arith.addf %483, %487 : vector<8x32xf32>
    %489 = math.tanh %488 : vector<8x32xf32>
    %cst_146 = arith.constant 1.000000e+00 : f32
    %490 = vector.broadcast %cst_146 : f32 to vector<8x32xf32>
    %491 = arith.subf %490, %482 : vector<8x32xf32>
    %492 = arith.mulf %491, %489 : vector<8x32xf32>
    %493 = arith.mulf %482, %465 : vector<8x32xf32>
    %494 = arith.addf %492, %493 : vector<8x32xf32>
    %c56_147 = arith.constant 56 : index
    %c0_148 = arith.constant 0 : index
    %495 = vector.load %arg13[%c56_147, %c0_148] : memref<64x32xf32, #tpu.memory_space<vmem>>, vector<8x32xf32>
    tpu.vector_store %arg13[%c56_147, %c0_148], %494 {strides = array<i32>} : memref<64x32xf32, #tpu.memory_space<vmem>>, vector<8x32xf32>,
    %c0_149 = arith.constant 0 : index
    %c0_150 = arith.constant 0 : index
    %496 = tpu.strided_load %arg13[%c0_149, %c0_150] {strides = array<i32: 8, 1>} : memref<64x32xf32, #tpu.memory_space<vmem>>, vector<8x32xf32>
    %c0_151 = arith.constant 0 : index
    %c0_152 = arith.constant 0 : index
    %497 = vector.load %arg14[%c0_151, %c0_152] : memref<16x32xf32, #tpu.memory_space<vmem>>, vector<8x32xf32>
    tpu.vector_store %arg14[%c0_151, %c0_152], %496 {strides = array<i32>} : memref<16x32xf32, #tpu.memory_space<vmem>>, vector<8x32xf32>,
    %c1 = arith.constant 1 : index
    %c0_153 = arith.constant 0 : index
    %498 = tpu.strided_load %arg13[%c1, %c0_153] {strides = array<i32: 8, 1>} : memref<64x32xf32, #tpu.memory_space<vmem>>, vector<8x32xf32>
    %c8_154 = arith.constant 8 : index
    %c0_155 = arith.constant 0 : index
    %499 = vector.load %arg14[%c8_154, %c0_155] : memref<16x32xf32, #tpu.memory_space<vmem>>, vector<8x32xf32>
    tpu.vector_store %arg14[%c8_154, %c0_155], %498 {strides = array<i32>} : memref<16x32xf32, #tpu.memory_space<vmem>>, vector<8x32xf32>,
    %c2_i32_156 = arith.constant 2 : i32
    %500 = tpu.memref_slice %arg18[%c2_i32_156] : memref<3x!tpu.dma_semaphore, #tpu.memory_space<semaphore_mem>> -> memref<1x!tpu.dma_semaphore, #tpu.memory_space<semaphore_mem>>
    %501 = tpu.memref_squeeze %500 : memref<1x!tpu.dma_semaphore, #tpu.memory_space<semaphore_mem>> -> memref<!tpu.dma_semaphore, #tpu.memory_space<semaphore_mem>>
    tpu.wait_dma2 semaphore(%501 : memref<!tpu.dma_semaphore, #tpu.memory_space<semaphore_mem>>) src(%arg10 : memref<32x1536xbf16, #tpu.memory_space<any>>) dst(%arg17 : memref<32x1536xbf16, #tpu.memory_space<vmem>>)
    %c0_157 = arith.constant 0 : index
    %c0_158 = arith.constant 0 : index
    %502 = vector.load %arg14[%c0_157, %c0_158] : memref<16x32xf32, #tpu.memory_space<vmem>>, vector<16x32xf32>
    %503 = arith.truncf %502 : vector<16x32xf32> to vector<16x32xbf16>
    %c0_159 = arith.constant 0 : index
    %c0_160 = arith.constant 0 : index
    %504 = vector.load %arg17[%c0_159, %c0_160] : memref<32x1536xbf16, #tpu.memory_space<vmem>>, vector<32x1536xbf16>
    %cst_161 = arith.constant dense<0.000000e+00> : vector<16x1536xf32>
    %505 = tpu.matmul %503, %504, %cst_161 {dimension_numbers = #tpu.dot_dimension_numbers<[1], [0], [0], [1], [0, 0, 1, 1], [], []>} : vector<16x32xbf16>, vector<32x1536xbf16>, vector<16x1536xf32> -> vector<16x1536xf32>
    %c0_162 = arith.constant 0 : index
    %c0_163 = arith.constant 0 : index
    %506 = vector.load %arg7[%c0_162, %c0_163] : memref<1x1536xf32, #tpu.memory_space<vmem>>, vector<1x1536xf32>
    %507 = vector.broadcast %506 : vector<1x1536xf32> to vector<16x1536xf32>
    %508 = arith.addf %505, %507 : vector<16x1536xf32>
    %c0_164 = arith.constant 0 : index
    %c0_165 = arith.constant 0 : index
    %509 = vector.load %arg11[%c0_164, %c0_165] : memref<16x1536xf32, #tpu.memory_space<vmem>>, vector<16x1536xf32>
    tpu.vector_store %arg11[%c0_164, %c0_165], %508 {strides = array<i32>} : memref<16x1536xf32, #tpu.memory_space<vmem>>, vector<16x1536xf32>,
    return
  }
}

</mosaic_0001>

<bundles_post_ra>
// kernel: generator_forward.1
= control target key start
LH: loop header
LB: loop body
LE: loop exit
PB: predicated region body
PF: predicated region fallthrough
CT: control target
= control target key end

     0   :  { %16 = vsyncpa [#allocation10], 0  ;;  %s3468_s0 = inlined_call_operand.vmem [shape: f32[64,128], index: 0, kind: input, shape index: {}]   ;;  %s3469_s1 = inlined_call_operand.vmem [shape: bf16[128,128], index: 1, kind: input, shape index: {}]   ;;  %s3470_s2 = inlined_call_operand.vmem [shape: bf16[32,128], index: 2, kind: input, shape index: {}]   ;;  %s3471_s3 = inlined_call_operand.hbm [shape: f32[1,128], index: 3, kind: input, shape index: {}]   ;;  %s3472_s4 = inlined_call_operand.hbm [shape: f32[1,32], index: 4, kind: input, shape index: {}]   ;;  %s3473_s5 = inlined_call_operand.vmem [shape: f32[1,128], index: 5, kind: input, shape index: {}]   ;;  %s3474_s6 = inlined_call_operand.vmem [shape: f32[1,32], index: 6, kind: input, shape index: {}]   ;;  %s3475_s7 = inlined_call_operand.vmem [shape: f32[1,1536], index: 7, kind: input, shape index: {}]   ;;  %s3476_s8 = inlined_call_operand.vmem [shape: bf16[32,128], index: 8, kind: input, shape index: {}]   ;;  %s3477_s9 = inlined_call_operand.vmem [shape: bf16[32,128], index: 9, kind: input, shape index: {}]   ;;  %s3478_s10 = inlined_call_operand.hbm [shape: bf16[32,1536], index: 10, kind: input, shape index: {}]   ;;  %s3479_s11 = inlined_call_operand.vmem [shape: f32[16,1536], index: 11, kind: output, shape index: {}]  }
   0x1   :  { %17 = vsyncpa [#allocation12], 0  ;;  %s2848_s17 = smov [#allocation9]   ;;  %s2849_s19 = smov [#allocation11]  }
   0x2   :  { %s30_s18 = sshll.u32 %s2848_s17, 4  ;;  %s40_s20 = sshll.u32 %s2849_s19, 4  ;;  %s31_s18 = int_to_ptr.vmem [resolvable:$true] %s30_s18  ;;  %s41_s20 = int_to_ptr.vmem [resolvable:$true] %s40_s20 }
   0x3   :  { %s2786_s21 = scalar_lea.vmem %s31_s18, 16  ;;  %s2790_s22 = scalar_lea.vmem %s31_s18, 32 }
   0x4   :  { %p2787_p0 = scmp.ne.s32.totalorder %s31_s18, %s2786_s21  ;;  %p2791_p1 = scmp.lt.s32.totalorder %s31_s18, %s31_s18 }
   0x5   :  { %p2792_p2 = scmp.lt.s32.totalorder %s2790_s22, %s2786_s21 }
   0x7   :  { %p2793_p3 = por %p2792_p2, %p2791_p1 }
   0x9   :  { %p2794_p4 = pnand %p2793_p3, %p2787_p0 }
   0xb   :  { %2797 = shalt.err (!%p2794_p4)
}
   0xc   :  { %33 = dma.hbm_to_vmem [thread:$0]  %s3471_s3, 16, %s31_s18, [#allocation10]  }
   0xd   :  { %s2806_s25 = scalar_lea.vmem %s41_s20, 16  ;;  %s2810_s26 = scalar_lea.vmem %s41_s20, 32 }
   0xe   :  { %p2807_p5 = scmp.ne.s32.totalorder %s41_s20, %s2806_s25  ;;  %p2811_p6 = scmp.lt.s32.totalorder %s41_s20, %s41_s20 }
   0xf   :  { %p2812_p7 = scmp.lt.s32.totalorder %s2810_s26, %s2806_s25 }
  0x11   :  { %p2813_p8 = por %p2812_p7, %p2811_p6 }
  0x13   :  { %p2814_p9 = pnand %p2813_p8, %p2807_p5 }
  0x15   :  { %2817 = shalt.err (!%p2814_p9)
}
  0x16   :  { %43 = dma.hbm_to_vmem [thread:$0]  %s3472_s4, 16, %s41_s20, [#allocation12]  }
  0x17   :  { %2838 = dma.done.wait [#allocation10], 16  }
  0x18   :  { %2839 = vsyncadd [#allocation10], 4294967280 }
  0x19   :  { %2840 = dma.done.wait [#allocation12], 16  }
  0x1a   :  { %2841 = vsyncadd [#allocation12], 4294967280  ;;  %v90_v0 = vld [vmem:[%s3476_s8] sm:$0xff]  ;;  %v92_v1 = vld [vmem:[%s3476_s8 + $0x8] sm:$0xff] }
  0x1b   :  { %91 = vst [vmem:[#allocation5] sm:$0xff] %v90_v0  ;;  %93 = vst [vmem:[#allocation5 + $0x8] sm:$0xff] %v92_v1 }
  0x1c   :  { %101 = vsyncadd [#allocation8], 256  ;;  %v136_v2 = vld [vmem:[%s3477_s9] sm:$0xff]  ;;  %v138_v3 = vld [vmem:[%s3477_s9 + $0x8] sm:$0xff]  ;;  %v2850_v5 = vmov 0.0   ;;  %vm2851_vm0 = vmmov 0  }
  0x1d   :  { %137 = vst [vmem:[#allocation6] sm:$0xff] %v136_v2  ;;  %139 = vst [vmem:[#allocation6 + $0x8] sm:$0xff] %v138_v3  ;;  %v2632_v4 = vld [vmem:[%s3469_s1 + $0x38] sm:$0xff]   ;;  %2483 = vmatprep.subr.bf16.mxu1 %v2850_v5  ;;  %v2942_v6 = vld [vmem:[%s3470_s2 + $0x8] sm:$0xff]   ;;  %2487 = vmatprep.mubr.msk.bf16.mxu1 %vm2851_vm0, %v2850_v5  ;;  %v2852_v11 = vmov 0  }
  0x1e   :  { %2459 = vmatprep.subr.bf16.mxu0 %v2632_v4  ;;  %v2634_v7 = vld [vmem:[%s3469_s1 + $0x30] sm:$0xff]   ;;  %2484 = vmatpush3.bf16.msra.mxu1 %v2942_v6  ;;  %v2953_v8 = vld [vmem:[%s3470_s2] sm:$0xff]   ;;  %v2636_v9 = vld [vmem:[%s3469_s1 + $0x28] sm:$0xff]  }
  0x1f   :  { %2460 = vmatpush3.bf16.msra.mxu0 %v2632_v4  ;;  %2485 = vmatprep.subr.bf16.mxu1 %v2850_v5  ;;  %v2637_v10 = vld [vmem:[%s3469_s1 + $0x20] sm:$0xff]   ;;  %v161_v13 = vld [vmem:[%s3468_s0 + $0x8] sm:$0xff] }
  0x20   :  { %2461 = vmatprep.subr.bf16.mxu0 %v2634_v7  ;;  %v160_v12 = vld [vmem:[%s3468_s0] sm:$0xff] }
  0x21   :  { %v168_v14 = vpack.c.bf16 %v161_v13, %v160_v12 }
  0x22   :  { %2486 = vmatpush3.bf16.msra.mxu1 %v2953_v8 }
  0x23   :  { %2462 = vmatpush3.bf16.msra.mxu0 %v2634_v7  ;;  %2491 = vmatprep.subr.bf16.mxu1 %v2850_v5 }
  0x24   :  { %2463 = vmatprep.subr.bf16.mxu0 %v2636_v9 }
  0x25   :  { %2488 = vmatmul.mubr.bf16.vlgmr.msra.gmra.mxu1 %v2852_v11 }
  0x26   :  { %2492 = vmatpush3.bf16.msra.mxu1 %v2942_v6 }
  0x27   :  { %2464 = vmatpush3.bf16.msra.mxu0 %v2636_v9 }
  0x28   :  { %147 = vsyncadd [#allocation8 + $0x1], 256  ;;  %2465 = vmatprep.subr.bf16.mxu0 %v2637_v10  ;;  %v2638_v15 = vld [vmem:[%s3469_s1 + $0x18] sm:$0xff]   ;;  %2493 = vmatprep.subr.bf16.mxu1 %v2850_v5  ;;  %v2639_v16 = vld [vmem:[%s3469_s1 + $0x10] sm:$0xff]   ;;  %s2854_s19 = smov 96   ;;  %s2855_s20 = smov 64  }
  0x29   :  { %2475 = vmatprep.mubr.bf16.mxu0 %v168_v14  ;;  %2495 = vmatprep.mubr.msk.bf16.mxu1 %vm2851_vm0, %v2850_v5  ;;  %v2640_v17 = vld [vmem:[%s3469_s1 + $0x8] sm:$0xff]   ;;  %v2641_v18 = vld [vmem:[%s3469_s1] sm:$0xff]   ;;  %v162_v19 = vld [vmem:[%s3468_s0 + $0x10] sm:$0xff]  ;;  %s2853_s1 = smov 32   ;;  %vm334_vm1 = vcmask 261120  }
  0x2a   :  { %2494 = vmatpush3.bf16.msra.mxu1 %v2953_v8  ;;  %v163_v20 = vld [vmem:[%s3468_s0 + $0x18] sm:$0xff]  ;;  %v3000_v22 = vld [vmem:[#allocation11] ss:$0 sm:$0xff]  ;;  %v3006_v29 = vld [vmem:[#allocation9] ss:$0 sm:$0xff] }
  0x2b   :  { %2466 = vmatpush3.bf16.msra.mxu0 %v2637_v10  ;;  %2499 = vmatprep.subr.bf16.mxu1 %v2850_v5  ;;  %v169_v21 = vpack.c.bf16 %v163_v20, %v162_v19 }
  0x2c   :  { %2467 = vmatprep.subr.bf16.mxu0 %v2638_v15 }
  0x2f   :  { %2468 = vmatpush3.bf16.msra.mxu0 %v2638_v15 }
  0x30   :  { %2469 = vmatprep.subr.bf16.mxu0 %v2639_v16 }
  0x33   :  { %2470 = vmatpush3.bf16.msra.mxu0 %v2639_v16 }
  0x34   :  { %2471 = vmatprep.subr.bf16.mxu0 %v2640_v17 }
  0x37   :  { %2472 = vmatpush3.bf16.msra.mxu0 %v2640_v17 }
  0x38   :  { %2473 = vmatprep.subr.bf16.mxu0 %v2641_v18 }
  0x3b   :  { %2474 = vmatpush3.bf16.msra.mxu0 %v2641_v18 }
  0x3c   :  { %2523 = vmatprep.subr.bf16.mxu0 %v2850_v5 }
  0x3e   :  { %2476 = vmatmul.mubr.bf16.vlgmr.msra.gmra.mxu0 %v169_v21 }
  0x3f   :  { %2524 = vmatpush3.bf16.msra.mxu0 %v2942_v6 }
  0x40   :  { %2525 = vmatprep.subr.bf16.mxu0 %v2850_v5 }
  0x43   :  { %2526 = vmatpush3.bf16.msra.mxu0 %v2953_v8 }
  0x44   :  { %2539 = vmatprep.subr.bf16.mxu0 %v2850_v5 }
  0xe5   :  { %v372_v23 = vpop.f32.mrf.mxu1 }
  0xe6   :  { %v391_v24 = vadd.f32 %v3000_v22, %v372_v23 }
  0xe7   :  { %v2489_v25 = vpop.f32.mrf.mxu1 }
  0xe8   :  { %393 = vrot.lane.b32.xlu0 %v391_v24, %s2853_s1 }
  0xe9   :  { %v375_v26 = vpop.f32.mrf.mxu1 }
  0xeb   :  { %v2490_v27 = vpop.f32.mrf.mxu1 }
  0xfe   :  { %v3004_v28 = vpop.f32.mrf.mxu0 }
  0xff   :  { %v290_v19 = vadd.f32 %v3004_v28, %v3006_v29 }
 0x100   :  { %v281_v30 = vpop.f32.mrf.mxu0 }
 0x101   :  { %v282_v31 = vadd.f32 %v3006_v29, %v281_v30 }
 0x102   :  { %v3025_v54 = vpop.f32.mrf.mxu0 }
 0x103   :  { %v378_v32 = vadd.f32 %v372_v23, %v282_v31 }
 0x104   :  { %v284_v55 = vpop.f32.mrf.mxu0 }
 0x105   :  { %v2319_v33 = vmul.f32 -1.442695, %v378_v32  ;;  %v285_v56 = vadd.f32 %v3006_v29, %v284_v55 }
 0x107   :  { %2642 = vpow2.f32 %v2319_v33 }
 0x114   :  { %v2643_v34 = vpop.eup %2642 }
 0x115   :  { %v382_v35 = vadd.f32 1.0, %v2643_v34 }
 0x117   :  { %2644 = vrcp.f32 %v382_v35 }
 0x124   :  { %v2645_v36 = vpop.eup %2644 }
 0x125   :  { %v403_v42 = vsub.f32 1.0, %v2645_v36  ;;  %v409_v44 = vmul.f32 0.0, %v2645_v36 }
 0x15a   :  { %v394_v37 = vpop.permute.xlu0 %393 }
 0x15b   :  { %v396_v38 = vmul.f32 %v2645_v36, %v394_v37 }
 0x15d   :  { %398 = vrot.lane.b32.xlu0 %v396_v38, %s2854_s19 }
 0x1cf   :  { %v399_v39 = vpop.permute.xlu0 %398 }
 0x1d0   :  { %v401_v40 = vadd.f32 %v399_v39, %v282_v31 }
 0x1d2   :  { %2646 = vtanh.f32 %v401_v40 }
 0x1df   :  { %v2647_v41 = vpop.eup %2646 }
 0x1e0   :  { %405 = vrot.lane.b32.xlu1 %v2647_v41, %s2855_s20 }
 0x252   :  { %v406_v43 = vpop.permute.xlu1 %405 }
 0x253   :  { %v408_v45 = vmul.f32 %v406_v43, %v403_v42 }
 0x255   :  { %v3011_v46 = vadd.f32 %v409_v44, %v408_v45  ;;  %v293_v44 = vadd.f32 %v3025_v54, %v3006_v29  ;;  %v165_v54 = vld [vmem:[%s3468_s0 + $0x28] sm:$0xff] }
 0x257   :  { %v417_v47 = vpack.c.bf16 %v3011_v46, %v3011_v46 }
 0x259   :  { %419 = vrot.lane.b32.xlu1 %v417_v47, %s2855_s20 }
 0x2cb   :  { %v420_v48 = vpop.permute.xlu1 %419 }
 0x2cc   :  { %2496 = vmatmul.mubr.msk.bf16.vlgmr.msra.gmra.mxu1 %vm334_vm1, %v420_v48 }
 0x2cd   :  { %2500 = vmatpush3.bf16.msra.mxu1 %v2942_v6  ;;  %2503 = vmatprep.mubr.msk.bf16.mxu1 %vm2851_vm0, %v2850_v5 }
 0x2ce   :  { %2501 = vmatprep.subr.bf16.mxu1 %v2850_v5 }
 0x2d1   :  { %2502 = vmatpush3.bf16.msra.mxu1 %v2953_v8 }
 0x2d2   :  { %2507 = vmatprep.subr.bf16.mxu1 %v2850_v5 }
 0x38c   :  { %v458_v49 = vpop.f32.mrf.mxu1 }
 0x38d   :  { %v471_v50 = vadd.f32 %v3000_v22, %v458_v49  ;;  %v464_v57 = vadd.f32 %v458_v49, %v285_v56 }
 0x38e   :  { %v2497_v51 = vpop.f32.mrf.mxu1 }
 0x38f   :  { %473 = vrot.lane.b32.xlu0 %v471_v50, %s2853_s1  ;;  %v2322_v58 = vmul.f32 -1.442695, %v464_v57  ;;  %v166_v57 = vld [vmem:[%s3468_s0 + $0x30] sm:$0xff] }
 0x390   :  { %v461_v52 = vpop.f32.mrf.mxu1 }
 0x391   :  { %2648 = vpow2.f32 %v2322_v58 }
 0x392   :  { %v2498_v53 = vpop.f32.mrf.mxu1 }
 0x39e   :  { %v2649_v59 = vpop.eup %2648 }
 0x39f   :  { %v468_v60 = vadd.f32 1.0, %v2649_v59  ;;  %v167_v59 = vld [vmem:[%s3468_s0 + $0x38] sm:$0xff] }
 0x3a1   :  { %2650 = vrcp.f32 %v468_v60  ;;  %v171_v60 = vpack.c.bf16 %v167_v59, %v166_v57 }
 0x3ae   :  { %v2651_v61 = vpop.eup %2650 }
 0x3af   :  { %v483_v3 = vsub.f32 1.0, %v2651_v61  ;;  %v489_v7 = vmul.f32 %v2651_v61, %v3011_v46 }
 0x401   :  { %v474_v62 = vpop.permute.xlu0 %473 }
 0x402   :  { %v476_v63 = vmul.f32 %v2651_v61, %v474_v62 }
 0x404   :  { %478 = vrot.lane.b32.xlu1 %v476_v63, %s2854_s19 }
 0x476   :  { %v479_v0 = vpop.permute.xlu1 %478 }
 0x477   :  { %v481_v1 = vadd.f32 %v479_v0, %v285_v56  ;;  %v164_v56 = vld [vmem:[%s3468_s0 + $0x20] sm:$0xff]  ;;  %s2856_s0 = smov [#allocation7]  }
 0x478   :  { %v170_v58 = vpack.c.bf16 %v165_v54, %v164_v56  ;;  %s156_s27 = sshll.u32 %s2856_s0, 4  ;;  %s157_s27 = int_to_ptr.vmem [resolvable:$true] %s156_s27 }
 0x479   :  { %2652 = vtanh.f32 %v481_v1  ;;  %s2826_s28 = scalar_lea.vmem %s157_s27, 3072  ;;  %p2831_p11 = scmp.lt.s32.totalorder %s157_s27, %s157_s27 }
 0x47a   :  { %2479 = vmatprep.mubr.bf16.mxu0 %v170_v58  ;;  %p2827_p10 = scmp.ne.s32.totalorder %s157_s27, %s2826_s28  ;;  %p2832_p12 = scmp.lt.s32.totalorder %s2826_s28, %s2826_s28 }
 0x47b   :  { %2480 = vmatmul.mubr.bf16.gmra.mxu0 %v171_v60 }
 0x47c   :  { %2527 = vmatprep.mubr.msk.bf16.mxu0 %vm2851_vm0, %v2850_v5  ;;  %p2833_p13 = por %p2832_p12, %p2831_p11 }
 0x47e   :  { %p2834_p0 = pnand %p2833_p13, %p2827_p10 }
 0x486   :  { %v2653_v2 = vpop.eup %2652 }
 0x487   :  { %485 = vrot.lane.b32.xlu0 %v2653_v2, %s2855_s20 }
 0x4f9   :  { %v486_v4 = vpop.permute.xlu0 %485 }
 0x4fa   :  { %v488_v9 = vmul.f32 %v486_v4, %v483_v3 }
 0x4fc   :  { %v3031_v10 = vadd.f32 %v489_v7, %v488_v9 }
 0x4fe   :  { %v497_v12 = vpack.c.bf16 %v3031_v10, %v3031_v10 }
 0x500   :  { %499 = vrot.lane.b32.xlu1 %v497_v12, %s2855_s20 }
 0x572   :  { %v500_v13 = vpop.permute.xlu1 %499 }
 0x573   :  { %2504 = vmatmul.mubr.msk.bf16.vlgmr.msra.gmra.mxu1 %vm334_vm1, %v500_v13 }
 0x574   :  { %2508 = vmatpush3.bf16.msra.mxu1 %v2942_v6  ;;  %2511 = vmatprep.mubr.msk.bf16.mxu1 %vm2851_vm0, %v2850_v5 }
 0x575   :  { %2509 = vmatprep.subr.bf16.mxu1 %v2850_v5 }
 0x578   :  { %2510 = vmatpush3.bf16.msra.mxu1 %v2953_v8 }
 0x579   :  { %2515 = vmatprep.subr.bf16.mxu1 %v2850_v5 }
 0x633   :  { %v538_v14 = vpop.f32.mrf.mxu1 }
 0x634   :  { %v551_v15 = vadd.f32 %v3000_v22, %v538_v14  ;;  %v544_v20 = vadd.f32 %v538_v14, %v290_v19 }
 0x635   :  { %v2505_v16 = vpop.f32.mrf.mxu1 }
 0x636   :  { %553 = vrot.lane.b32.xlu0 %v551_v15, %s2853_s1  ;;  %v2324_v21 = vmul.f32 -1.442695, %v544_v20  ;;  %v3096_v15 = vpop.f32.mrf.mxu0 }
 0x637   :  { %v541_v17 = vpop.f32.mrf.mxu1 }
 0x638   :  { %2654 = vpow2.f32 %v2324_v21  ;;  %v297_v16 = vpop.f32.mrf.mxu0 }
 0x639   :  { %v2506_v18 = vpop.f32.mrf.mxu1  ;;  %v298_v17 = vadd.f32 %v3006_v29, %v297_v16 }
 0x645   :  { %v2655_v23 = vpop.eup %2654 }
 0x646   :  { %v548_v24 = vadd.f32 1.0, %v2655_v23 }
 0x648   :  { %2656 = vrcp.f32 %v548_v24 }
 0x655   :  { %v2657_v25 = vpop.eup %2656 }
 0x656   :  { %v563_v33 = vsub.f32 1.0, %v2657_v25  ;;  %v569_v28 = vmul.f32 %v2657_v25, %v3031_v10 }
 0x6a8   :  { %v554_v26 = vpop.permute.xlu0 %553 }
 0x6a9   :  { %v556_v27 = vmul.f32 %v2657_v25, %v554_v26 }
 0x6ab   :  { %558 = vrot.lane.b32.xlu1 %v556_v27, %s2854_s19 }
 0x71d   :  { %v559_v30 = vpop.permute.xlu1 %558 }
 0x71e   :  { %v561_v31 = vadd.f32 %v559_v30, %v290_v19 }
 0x720   :  { %2658 = vtanh.f32 %v561_v31 }
 0x72d   :  { %v2659_v32 = vpop.eup %2658 }
 0x72e   :  { %565 = vrot.lane.b32.xlu0 %v2659_v32, %s2855_s20 }
 0x7a0   :  { %v566_v34 = vpop.permute.xlu0 %565 }
 0x7a1   :  { %v568_v35 = vmul.f32 %v566_v34, %v563_v33 }
 0x7a3   :  { %v3050_v36 = vadd.f32 %v569_v28, %v568_v35 }
 0x7a5   :  { %v577_v37 = vpack.c.bf16 %v3050_v36, %v3050_v36 }
 0x7a7   :  { %579 = vrot.lane.b32.xlu1 %v577_v37, %s2855_s20 }
 0x819   :  { %v580_v38 = vpop.permute.xlu1 %579 }
 0x81a   :  { %2512 = vmatmul.mubr.msk.bf16.vlgmr.msra.gmra.mxu1 %vm334_vm1, %v580_v38  ;;  %v3113_v38 = vpop.f32.mrf.mxu0 }
 0x81b   :  { %2516 = vmatpush3.bf16.msra.mxu1 %v2942_v6  ;;  %2519 = vmatprep.mubr.msk.bf16.mxu1 %vm2851_vm0, %v2850_v5 }
 0x81c   :  { %2517 = vmatprep.subr.bf16.mxu1 %v2850_v5 }
 0x81f   :  { %2518 = vmatpush3.bf16.msra.mxu1 %v2953_v8 }
 0x820   :  { %2531 = vmatprep.subr.bf16.mxu1 %v2850_v5 }
 0x8da   :  { %v618_v39 = vpop.f32.mrf.mxu1 }
 0x8db   :  { %v631_v40 = vadd.f32 %v3000_v22, %v618_v39  ;;  %v624_v45 = vadd.f32 %v618_v39, %v293_v44  ;;  %v300_v39 = vpop.f32.mrf.mxu0 }
 0x8dc   :  { %v2513_v41 = vpop.f32.mrf.mxu1 }
 0x8dd   :  { %633 = vrot.lane.b32.xlu0 %v631_v40, %s2853_s1  ;;  %v2326_v47 = vmul.f32 -1.442695, %v624_v45 }
 0x8de   :  { %v621_v42 = vpop.f32.mrf.mxu1 }
 0x8df   :  { %2660 = vpow2.f32 %v2326_v47 }
 0x8e0   :  { %v2514_v43 = vpop.f32.mrf.mxu1 }
 0x8ec   :  { %v2661_v48 = vpop.eup %2660 }
 0x8ed   :  { %v628_v49 = vadd.f32 1.0, %v2661_v48 }
 0x8ef   :  { %2662 = vrcp.f32 %v628_v49 }
 0x8fc   :  { %v2663_v50 = vpop.eup %2662 }
 0x8fd   :  { %v643_v62 = vsub.f32 1.0, %v2663_v50  ;;  %v649_v0 = vmul.f32 %v2663_v50, %v3050_v36 }
 0x94f   :  { %v634_v51 = vpop.permute.xlu0 %633 }
 0x950   :  { %v636_v52 = vmul.f32 %v2663_v50, %v634_v51 }
 0x952   :  { %638 = vrot.lane.b32.xlu1 %v636_v52, %s2854_s19 }
 0x9c4   :  { %v639_v53 = vpop.permute.xlu1 %638 }
 0x9c5   :  { %v641_v55 = vadd.f32 %v639_v53, %v293_v44 }
 0x9c7   :  { %2664 = vtanh.f32 %v641_v55 }
 0x9d4   :  { %v2665_v61 = vpop.eup %2664 }
 0x9d5   :  { %645 = vrot.lane.b32.xlu0 %v2665_v61, %s2855_s20 }
 0xa47   :  { %v646_v63 = vpop.permute.xlu0 %645 }
 0xa48   :  { %v648_v1 = vmul.f32 %v646_v63, %v643_v62 }
 0xa4a   :  { %v3083_v2 = vadd.f32 %v649_v0, %v648_v1 }
 0xa4c   :  { %v657_v3 = vpack.c.bf16 %v3083_v2, %v3083_v2 }
 0xa4e   :  { %659 = vrot.lane.b32.xlu1 %v657_v3, %s2855_s20 }
 0xac0   :  { %v660_v4 = vpop.permute.xlu1 %659 }
 0xac1   :  { %2520 = vmatmul.mubr.msk.bf16.vlgmr.msra.gmra.mxu1 %vm334_vm1, %v660_v4  ;;  %v306_v4 = vadd.f32 %v3096_v15, %v3006_v29 }
 0xac2   :  { %2532 = vmatpush3.bf16.msra.mxu1 %v2942_v6  ;;  %2535 = vmatprep.mubr.msk.bf16.mxu1 %vm2851_vm0, %v2850_v5 }
 0xac3   :  { %2533 = vmatprep.subr.bf16.mxu1 %v2850_v5 }
 0xac6   :  { %2534 = vmatpush3.bf16.msra.mxu1 %v2953_v8 }
 0xb81   :  { %v698_v7 = vpop.f32.mrf.mxu1 }
 0xb82   :  { %v711_v9 = vadd.f32 %v3000_v22, %v698_v7  ;;  %v704_v18 = vadd.f32 %v698_v7, %v298_v17 }
 0xb83   :  { %v2521_v12 = vpop.f32.mrf.mxu1 }
 0xb84   :  { %713 = vrot.lane.b32.xlu0 %v711_v9, %s2853_s1  ;;  %v2328_v19 = vmul.f32 -1.442695, %v704_v18 }
 0xb85   :  { %v701_v13 = vpop.f32.mrf.mxu1 }
 0xb86   :  { %2666 = vpow2.f32 %v2328_v19 }
 0xb87   :  { %v2522_v14 = vpop.f32.mrf.mxu1 }
 0xb93   :  { %v2667_v20 = vpop.eup %2666 }
 0xb94   :  { %v708_v21 = vadd.f32 1.0, %v2667_v20 }
 0xb96   :  { %2668 = vrcp.f32 %v708_v21 }
 0xba3   :  { %v2669_v23 = vpop.eup %2668 }
 0xba4   :  { %v723_v31 = vsub.f32 1.0, %v2669_v23  ;;  %v729_v33 = vmul.f32 %v2669_v23, %v3083_v2 }
 0xbf6   :  { %v714_v24 = vpop.permute.xlu0 %713 }
 0xbf7   :  { %v716_v25 = vmul.f32 %v2669_v23, %v714_v24 }
 0xbf9   :  { %718 = vrot.lane.b32.xlu1 %v716_v25, %s2854_s19 }
 0xc6b   :  { %v719_v26 = vpop.permute.xlu1 %718 }
 0xc6c   :  { %v721_v27 = vadd.f32 %v719_v26, %v298_v17 }
 0xc6e   :  { %2670 = vtanh.f32 %v721_v27 }
 0xc7b   :  { %v2671_v30 = vpop.eup %2670 }
 0xc7c   :  { %725 = vrot.lane.b32.xlu0 %v2671_v30, %s2855_s20 }
 0xcee   :  { %v726_v32 = vpop.permute.xlu0 %725 }
 0xcef   :  { %v728_v34 = vmul.f32 %v726_v32, %v723_v31 }
 0xcf1   :  { %v3102_v28 = vadd.f32 %v729_v33, %v728_v34 }
 0xcf3   :  { %v737_v35 = vpack.c.bf16 %v3102_v28, %v3102_v28 }
 0xcf5   :  { %739 = vrot.lane.b32.xlu1 %v737_v35, %s2855_s20  ;;  %v309_v35 = vadd.f32 %v3113_v38, %v3006_v29 }
 0xd67   :  { %v740_v37 = vpop.permute.xlu1 %739 }
 0xd68   :  { %2528 = vmatmul.mubr.msk.bf16.vlgmr.msra.gmra.mxu0 %vm334_vm1, %v740_v37 }
 0xd69   :  { %2540 = vmatpush3.bf16.msra.mxu0 %v2942_v6  ;;  %2543 = vmatprep.mubr.msk.bf16.mxu0 %vm2851_vm0, %v2850_v5  ;;  %v301_v6 = vadd.f32 %v3006_v29, %v300_v39 }
 0xd6a   :  { %2541 = vmatprep.subr.bf16.mxu0 %v2850_v5 }
 0xd6d   :  { %2542 = vmatpush3.bf16.msra.mxu0 %v2953_v8 }
 0xe28   :  { %v778_v40 = vpop.f32.mrf.mxu0 }
 0xe29   :  { %v791_v41 = vadd.f32 %v3000_v22, %v778_v40  ;;  %v784_v45 = vadd.f32 %v778_v40, %v301_v6 }
 0xe2a   :  { %v2529_v42 = vpop.f32.mrf.mxu0 }
 0xe2b   :  { %793 = vrot.lane.b32.xlu0 %v791_v41, %s2853_s1  ;;  %v2330_v47 = vmul.f32 -1.442695, %v784_v45 }
 0xe2c   :  { %v781_v43 = vpop.f32.mrf.mxu0 }
 0xe2d   :  { %2672 = vpow2.f32 %v2330_v47 }
 0xe2e   :  { %v2530_v44 = vpop.f32.mrf.mxu0 }
 0xe3a   :  { %v2673_v48 = vpop.eup %2672 }
 0xe3b   :  { %v788_v49 = vadd.f32 1.0, %v2673_v48 }
 0xe3d   :  { %2674 = vrcp.f32 %v788_v49 }
 0xe4a   :  { %v2675_v8 = vpop.eup %2674 }
 0xe4b   :  { %v803_v56 = vsub.f32 1.0, %v2675_v8  ;;  %v809_v57 = vmul.f32 %v2675_v8, %v3102_v28 }
 0xe9d   :  { %v794_v50 = vpop.permute.xlu0 %793 }
 0xe9e   :  { %v796_v51 = vmul.f32 %v2675_v8, %v794_v50 }
 0xea0   :  { %798 = vrot.lane.b32.xlu1 %v796_v51, %s2854_s19 }
 0xf12   :  { %v799_v52 = vpop.permute.xlu1 %798 }
 0xf13   :  { %v801_v53 = vadd.f32 %v799_v52, %v301_v6 }
 0xf15   :  { %2676 = vtanh.f32 %v801_v53 }
 0xf22   :  { %v2677_v55 = vpop.eup %2676 }
 0xf23   :  { %805 = vrot.lane.b32.xlu0 %v2677_v55, %s2855_s20 }
 0xf95   :  { %v806_v54 = vpop.permute.xlu0 %805 }
 0xf96   :  { %v808_v58 = vmul.f32 %v806_v54, %v803_v56 }
 0xf98   :  { %v3121_v59 = vadd.f32 %v809_v57, %v808_v58 }
 0xf9a   :  { %v817_v60 = vpack.c.bf16 %v3121_v59, %v3121_v59 }
 0xf9c   :  { %819 = vrot.lane.b32.xlu1 %v817_v60, %s2855_s20 }
0x100e   :  { %v820_v61 = vpop.permute.xlu1 %819 }
0x100f   :  { %2536 = vmatmul.mubr.msk.bf16.vlgmr.msra.gmra.mxu1 %vm334_vm1, %v820_v61 }
0x10cf   :  { %v858_v62 = vpop.f32.mrf.mxu1 }
0x10d0   :  { %v871_v63 = vadd.f32 %v3000_v22, %v858_v62  ;;  %v864_v7 = vadd.f32 %v858_v62, %v306_v4 }
0x10d1   :  { %v2537_v0 = vpop.f32.mrf.mxu1 }
0x10d2   :  { %873 = vrot.lane.b32.xlu0 %v871_v63, %s2853_s1  ;;  %v2332_v9 = vmul.f32 -1.442695, %v864_v7 }
0x10d3   :  { %v861_v1 = vpop.f32.mrf.mxu1 }
0x10d4   :  { %2678 = vpow2.f32 %v2332_v9 }
0x10d5   :  { %v2538_v3 = vpop.f32.mrf.mxu1 }
0x10e1   :  { %v2679_v12 = vpop.eup %2678 }
0x10e2   :  { %v868_v13 = vadd.f32 1.0, %v2679_v12 }
0x10e4   :  { %2680 = vrcp.f32 %v868_v13 }
0x10f1   :  { %v2681_v14 = vpop.eup %2680 }
0x10f2   :  { %v883_v21 = vsub.f32 1.0, %v2681_v14  ;;  %v889_v15 = vmul.f32 %v2681_v14, %v3121_v59 }
0x1144   :  { %v874_v16 = vpop.permute.xlu0 %873 }
0x1145   :  { %v876_v17 = vmul.f32 %v2681_v14, %v874_v16 }
0x1147   :  { %878 = vrot.lane.b32.xlu1 %v876_v17, %s2854_s19 }
0x11b9   :  { %v879_v18 = vpop.permute.xlu1 %878 }
0x11ba   :  { %v881_v19 = vadd.f32 %v879_v18, %v306_v4 }
0x11bc   :  { %2682 = vtanh.f32 %v881_v19 }
0x11c9   :  { %v2683_v20 = vpop.eup %2682 }
0x11ca   :  { %885 = vrot.lane.b32.xlu0 %v2683_v20, %s2855_s20 }
0x123c   :  { %v886_v23 = vpop.permute.xlu0 %885 }
0x123d   :  { %v888_v24 = vmul.f32 %v886_v23, %v883_v21 }
0x123f   :  { %v890_v25 = vadd.f32 %v889_v15, %v888_v24 }
0x1241   :  { %v897_v26 = vpack.c.bf16 %v890_v25, %v890_v25 }
0x1243   :  { %899 = vrot.lane.b32.xlu1 %v897_v26, %s2855_s20 }
0x12b5   :  { %v900_v27 = vpop.permute.xlu1 %899 }
0x12b6   :  { %2544 = vmatmul.mubr.msk.bf16.vlgmr.msra.gmra.mxu0 %vm334_vm1, %v900_v27 }
0x1376   :  { %v938_v30 = vpop.f32.mrf.mxu0 }
0x1377   :  { %v951_v31 = vadd.f32 %v3000_v22, %v938_v30  ;;  %v944_v37 = vadd.f32 %v938_v30, %v309_v35 }
0x1378   :  { %v2545_v32 = vpop.f32.mrf.mxu0 }
0x1379   :  { %953 = vrot.lane.b32.xlu0 %v951_v31, %s2853_s1  ;;  %v2334_v39 = vmul.f32 -1.442695, %v944_v37 }
0x137a   :  { %v941_v33 = vpop.f32.mrf.mxu0 }
0x137b   :  { %2684 = vpow2.f32 %v2334_v39 }
0x137c   :  { %v2546_v34 = vpop.f32.mrf.mxu0 }
0x1388   :  { %v2685_v40 = vpop.eup %2684 }
0x1389   :  { %v948_v41 = vadd.f32 1.0, %v2685_v40 }
0x138b   :  { %2686 = vrcp.f32 %v948_v41 }
0x1398   :  { %v2687_v42 = vpop.eup %2686 }
0x13eb   :  { %v954_v43 = vpop.permute.xlu0 %953 }
0x13ec   :  { %v956_v44 = vmul.f32 %v2687_v42, %v954_v43 }
0x13ee   :  { %958 = vrot.lane.b32.xlu1 %v956_v44, %s2854_s19 }
0x13f2   :  { %412 = vrot.lane.b32.xlu1 %v3011_v46, %s2855_s20 }
0x13f6   :  { %572 = vrot.lane.b32.xlu1 %v3050_v36, %s2855_s20 }
0x13fa   :  { %732 = vrot.lane.b32.xlu1 %v3102_v28, %s2855_s20 }
0x13fe   :  { %892 = vrot.lane.b32.xlu1 %v890_v25, %s2855_s20 }
0x1460   :  { %v959_v22 = vpop.permute.xlu1 %958 }
0x1461   :  { %v961_v29 = vadd.f32 %v959_v22, %v309_v35 }
0x1463   :  { %2688 = vtanh.f32 %v961_v29 }
0x1464   :  { %v413_v38 = vpop.permute.xlu1 %412 }
0x1465   :  { %415 = vst.msk [vmem:[#allocation3] sm:$0xff] %vm334_vm1, %v413_v38 }
0x1468   :  { %v573_v6 = vpop.permute.xlu1 %572 }
0x1469   :  { %575 = vst.msk [vmem:[#allocation3 + $0x10] sm:$0xff] %vm334_vm1, %v573_v6 }
0x146c   :  { %v733_v45 = vpop.permute.xlu1 %732 }
0x146d   :  { %735 = vst.msk [vmem:[#allocation3 + $0x20] sm:$0xff] %vm334_vm1, %v733_v45 }
0x1470   :  { %v2689_v46 = vpop.eup %2688  ;;  %v893_v47 = vpop.permute.xlu1 %892 }
0x1471   :  { %895 = vst.msk [vmem:[#allocation3 + $0x30] sm:$0xff] %vm334_vm1, %v893_v47  ;;  %965 = vrot.lane.b32.xlu0 %v2689_v46, %s2855_s20 }
0x1475   :  { %492 = vrot.lane.b32.xlu0 %v3031_v10, %s2855_s20 }
0x1479   :  { %652 = vrot.lane.b32.xlu0 %v3083_v2, %s2855_s20 }
0x147d   :  { %812 = vrot.lane.b32.xlu0 %v3121_v59, %s2855_s20 }
0x147e   :  { %2837 = shalt.err (!%p2834_p0)  }
0x147f   :  { %159 = dma.hbm_to_vmem [thread:$0]  %s3478_s10, 3072, %s157_s27, [#allocation8 + $0x2]  ;;  %v963_v10 = vsub.f32 1.0, %v2687_v42  ;;  %v969_v2 = vmul.f32 %v2687_v42, %v890_v25 }
0x14e3   :  { %v966_v36 = vpop.permute.xlu0 %965 }
0x14e4   :  { %v968_v28 = vmul.f32 %v966_v36, %v963_v10 }
0x14e6   :  { %v970_v48 = vadd.f32 %v969_v2, %v968_v28 }
0x14e7   :  { %v493_v49 = vpop.permute.xlu0 %492 }
0x14e8   :  { %495 = vst.msk [vmem:[#allocation3 + $0x8] sm:$0xff] %vm334_vm1, %v493_v49  ;;  %972 = vrot.lane.b32.xlu0 %v970_v48, %s2855_s20 }
0x14eb   :  { %v653_v8 = vpop.permute.xlu0 %652 }
0x14ec   :  { %655 = vst.msk [vmem:[#allocation3 + $0x18] sm:$0xff] %vm334_vm1, %v653_v8 }
0x14ef   :  { %v813_v50 = vpop.permute.xlu0 %812 }
0x14f0   :  { %815 = vst.msk [vmem:[#allocation3 + $0x28] sm:$0xff] %vm334_vm1, %v813_v50 }
0x155a   :  { %v973_v51 = vpop.permute.xlu0 %972 }
0x155b   :  { %975 = vst.msk [vmem:[#allocation3 + $0x38] sm:$0xff] %vm334_vm1, %v973_v51 }
0x155c   :  { %2842 = dma.done.wait [#allocation8], 256 }
0x155d   :  { %2843 = vsyncadd [#allocation8], 4294967040 }
0x155e   :  { %2844 = dma.done.wait [#allocation8 + $0x1], 256 }
0x155f   :  { %2845 = vsyncadd [#allocation8 + $0x1], 4294967040  ;;  %2559 = vmatprep.subr.bf16.mxu0 %v2850_v5  ;;  %2563 = vmatprep.mubr.msk.bf16.mxu0 %vm2851_vm0, %v2850_v5  ;;  %v2690_v52 = vld [vmem:[#allocation5 + $0x8] sm:$0xff]   ;;  %v3170_v53 = vld [vmem:[#allocation6 + $0x8] sm:$0xff]  }
0x1560   :  { %2547 = vmatprep.subr.bf16.mxu1 %v2690_v52  ;;  %v2692_v55 = vld [vmem:[#allocation5] sm:$0xff]   ;;  %2560 = vmatpush3.bf16.msra.mxu0 %v3170_v53  ;;  %v3173_v56 = vld [vmem:[#allocation6] sm:$0xff]   ;;  %v983_v57 = vld [vmem:[#allocation3 + $0x8] sm:$0xff] }
0x1561   :  { %2548 = vmatpush3.bf16.msra.mxu1 %v2690_v52  ;;  %2561 = vmatprep.subr.bf16.mxu0 %v2850_v5  ;;  %v982_v54 = vld [vmem:[#allocation3] sm:$0xff]  ;;  %v984_v58 = vld [vmem:[#allocation3 + $0x10] sm:$0xff]  ;;  %v985_v60 = vld [vmem:[#allocation3 + $0x18] sm:$0xff] }
0x1562   :  { %2549 = vmatprep.subr.bf16.mxu1 %v2692_v55  ;;  %v990_v59 = vpack.c.bf16 %v983_v57, %v982_v54  ;;  %v991_v61 = vpack.c.bf16 %v985_v60, %v984_v58  ;;  %v3195_v62 = vld [vmem:[%s3474_s6] ss:$0 sm:$0xff]  ;;  %v987_v2 = vld [vmem:[#allocation3 + $0x28] sm:$0xff]  ;;  %v988_v28 = vld [vmem:[#allocation3 + $0x30] sm:$0xff] }
0x1563   :  { %v3204_v9 = vld [vmem:[%s3473_s5] ss:$0 sm:$0xff]  ;;  %v989_v49 = vld [vmem:[#allocation3 + $0x38] sm:$0xff] }
0x1564   :  { %2562 = vmatpush3.bf16.msra.mxu0 %v3173_v56  ;;  %2551 = vmatprep.mubr.msk.bf16.mxu1 %vm334_vm1, %v990_v59  ;;  %v986_v36 = vld [vmem:[#allocation3 + $0x20] sm:$0xff]  ;;  %v993_v8 = vpack.c.bf16 %v989_v49, %v988_v28 }
0x1565   :  { %2550 = vmatpush3.bf16.msra.mxu1 %v2692_v55  ;;  %2567 = vmatprep.subr.bf16.mxu0 %v2850_v5  ;;  %v992_v48 = vpack.c.bf16 %v987_v2, %v986_v36 }
0x1566   :  { %2575 = vmatprep.subr.bf16.mxu1 %v2850_v5 }
0x1567   :  { %2564 = vmatmul.mubr.bf16.vlgmr.msra.gmra.mxu0 %v2852_v11 }
0x1568   :  { %2552 = vmatmul.mubr.msk.bf16.vlgmr.msra.gmra.mxu1 %vm334_vm1, %v991_v61  ;;  %2568 = vmatpush3.bf16.msra.mxu0 %v3170_v53 }
0x1569   :  { %2571 = vmatprep.mubr.msk.bf16.mxu0 %vm2851_vm0, %v2850_v5  ;;  %2569 = vmatprep.subr.bf16.mxu0 %v2850_v5 }
0x156a   :  { %2576 = vmatpush3.bf16.msra.mxu1 %v3170_v53  ;;  %2555 = vmatprep.mubr.msk.bf16.mxu1 %vm334_vm1, %v992_v48 }
0x156b   :  { %2577 = vmatprep.subr.bf16.mxu1 %v2850_v5 }
0x156c   :  { %2570 = vmatpush3.bf16.msra.mxu0 %v3173_v56 }
0x156d   :  { %2583 = vmatprep.subr.bf16.mxu0 %v2850_v5 }
0x156e   :  { %2578 = vmatpush3.bf16.msra.mxu1 %v3173_v56 }
0x156f   :  { %2591 = vmatprep.subr.bf16.mxu1 %v2850_v5 }
0x1570   :  { %2556 = vmatmul.mubr.msk.bf16.gmra.mxu1 %vm334_vm1, %v993_v8 }
0x1571   :  { %2579 = vmatprep.mubr.msk.bf16.mxu1 %vm2851_vm0, %v2850_v5 }
0x1627   :  { %v1154_v63 = vpop.f32.mrf.mxu0 }
0x1628   :  { %v1173_v0 = vadd.f32 %v3195_v62, %v1154_v63  ;;  %v3199_v7 = vpop.f32.mrf.mxu1 }
0x1629   :  { %v2565_v1 = vpop.f32.mrf.mxu0 }
0x162a   :  { %1175 = vrot.lane.b32.xlu0 %v1173_v0, %s2853_s1  ;;  %v1067_v12 = vpop.f32.mrf.mxu1 }
0x162b   :  { %v1157_v3 = vpop.f32.mrf.mxu0  ;;  %v1068_v13 = vadd.f32 %v3204_v9, %v1067_v12 }
0x162c   :  { %v3223_v41 = vpop.f32.mrf.mxu1 }
0x162d   :  { %v2566_v4 = vpop.f32.mrf.mxu0  ;;  %v1160_v14 = vadd.f32 %v1154_v63, %v1068_v13 }
0x162e   :  { %v1070_v42 = vpop.f32.mrf.mxu1 }
0x162f   :  { %v2344_v16 = vmul.f32 -1.442695, %v1160_v14  ;;  %v1071_v43 = vadd.f32 %v3204_v9, %v1070_v42  ;;  %v1076_v14 = vadd.f32 %v3199_v7, %v3204_v9 }
0x1630   :  { %v3245_v60 = vpop.f32.mrf.mxu1 }
0x1631   :  { %2694 = vpow2.f32 %v2344_v16 }
0x1632   :  { %v3247_v61 = vpop.f32.mrf.mxu1 }
0x1634   :  { %v3249_v63 = vpop.f32.mrf.mxu1 }
0x1636   :  { %v3251_v0 = vpop.f32.mrf.mxu1 }
0x163e   :  { %v2695_v17 = vpop.eup %2694 }
0x163f   :  { %v1164_v18 = vadd.f32 1.0, %v2695_v17 }
0x1641   :  { %2696 = vrcp.f32 %v1164_v18 }
0x164e   :  { %v2697_v19 = vpop.eup %2696 }
0x164f   :  { %v1185_v25 = vsub.f32 1.0, %v2697_v19  ;;  %v1191_v27 = vmul.f32 0.0, %v2697_v19 }
0x169c   :  { %v1176_v20 = vpop.permute.xlu0 %1175 }
0x169d   :  { %v1178_v21 = vmul.f32 %v2697_v19, %v1176_v20 }
0x169f   :  { %1180 = vrot.lane.b32.xlu0 %v1178_v21, %s2854_s19 }
0x1711   :  { %v1181_v23 = vpop.permute.xlu0 %1180 }
0x1712   :  { %v1183_v15 = vadd.f32 %v1181_v23, %v1068_v13 }
0x1714   :  { %2698 = vtanh.f32 %v1183_v15 }
0x1721   :  { %v2699_v24 = vpop.eup %2698 }
0x1722   :  { %1187 = vrot.lane.b32.xlu1 %v2699_v24, %s2855_s20 }
0x1794   :  { %v1188_v26 = vpop.permute.xlu1 %1187 }
0x1795   :  { %v1190_v30 = vmul.f32 %v1188_v26, %v1185_v25 }
0x1797   :  { %v3209_v31 = vadd.f32 %v1191_v27, %v1190_v30 }
0x1799   :  { %v1199_v32 = vpack.c.bf16 %v3209_v31, %v3209_v31 }
0x179b   :  { %1201 = vrot.lane.b32.xlu1 %v1199_v32, %s2855_s20 }
0x180d   :  { %v1202_v33 = vpop.permute.xlu1 %1201 }
0x180e   :  { %2572 = vmatmul.mubr.msk.bf16.vlgmr.msra.gmra.mxu0 %vm334_vm1, %v1202_v33 }
0x180f   :  { %2584 = vmatpush3.bf16.msra.mxu0 %v3170_v53  ;;  %2587 = vmatprep.mubr.msk.bf16.mxu0 %vm2851_vm0, %v2850_v5 }
0x1810   :  { %2585 = vmatprep.subr.bf16.mxu0 %v2850_v5 }
0x1813   :  { %2586 = vmatpush3.bf16.msra.mxu0 %v3173_v56 }
0x1814   :  { %2599 = vmatprep.subr.bf16.mxu0 %v2850_v5 }
0x18ce   :  { %v1240_v34 = vpop.f32.mrf.mxu0 }
0x18cf   :  { %v1253_v35 = vadd.f32 %v3195_v62, %v1240_v34  ;;  %v1246_v44 = vadd.f32 %v1240_v34, %v1071_v43 }
0x18d0   :  { %v2573_v37 = vpop.f32.mrf.mxu0 }
0x18d1   :  { %1255 = vrot.lane.b32.xlu0 %v1253_v35, %s2853_s1  ;;  %v2347_v22 = vmul.f32 -1.442695, %v1246_v44 }
0x18d2   :  { %v1243_v39 = vpop.f32.mrf.mxu0 }
0x18d3   :  { %2700 = vpow2.f32 %v2347_v22 }
0x18d4   :  { %v2574_v40 = vpop.f32.mrf.mxu0 }
0x18e0   :  { %v2701_v29 = vpop.eup %2700 }
0x18e1   :  { %v1250_v38 = vadd.f32 1.0, %v2701_v29 }
0x18e3   :  { %2702 = vrcp.f32 %v1250_v38 }
0x18f0   :  { %v2703_v6 = vpop.eup %2702 }
0x18f1   :  { %v1265_v51 = vsub.f32 1.0, %v2703_v6  ;;  %v1271_v55 = vmul.f32 %v2703_v6, %v3209_v31 }
0x1943   :  { %v1256_v45 = vpop.permute.xlu0 %1255 }
0x1944   :  { %v1258_v46 = vmul.f32 %v2703_v6, %v1256_v45 }
0x1946   :  { %1260 = vrot.lane.b32.xlu1 %v1258_v46, %s2854_s19 }
0x19b8   :  { %v1261_v47 = vpop.permute.xlu1 %1260 }
0x19b9   :  { %v1263_v10 = vadd.f32 %v1261_v47, %v1071_v43  ;;  %v1079_v43 = vadd.f32 %v3223_v41, %v3204_v9 }
0x19bb   :  { %2704 = vtanh.f32 %v1263_v10 }
0x19c8   :  { %v2705_v50 = vpop.eup %2704 }
0x19c9   :  { %1267 = vrot.lane.b32.xlu0 %v2705_v50, %s2855_s20 }
0x1a3b   :  { %v1268_v52 = vpop.permute.xlu0 %1267 }
0x1a3c   :  { %v1270_v54 = vmul.f32 %v1268_v52, %v1265_v51 }
0x1a3e   :  { %v3233_v57 = vadd.f32 %v1271_v55, %v1270_v54 }
0x1a40   :  { %v1279_v58 = vpack.c.bf16 %v3233_v57, %v3233_v57 }
0x1a42   :  { %1281 = vrot.lane.b32.xlu1 %v1279_v58, %s2855_s20 }
0x1ab4   :  { %v1282_v59 = vpop.permute.xlu1 %1281 }
0x1ab5   :  { %2580 = vmatmul.mubr.msk.bf16.vlgmr.msra.gmra.mxu1 %vm334_vm1, %v1282_v59  ;;  %v1084_v59 = vadd.f32 %v3204_v9, %v3247_v61 }
0x1ab6   :  { %2592 = vmatpush3.bf16.msra.mxu1 %v3170_v53  ;;  %2595 = vmatprep.mubr.msk.bf16.mxu1 %vm2851_vm0, %v2850_v5 }
0x1ab7   :  { %2593 = vmatprep.subr.bf16.mxu1 %v2850_v5 }
0x1aba   :  { %2594 = vmatpush3.bf16.msra.mxu1 %v3173_v56 }
0x1abb   :  { %2607 = vmatprep.subr.bf16.mxu1 %v2850_v5 }
0x1b75   :  { %v1320_v1 = vpop.f32.mrf.mxu1 }
0x1b76   :  { %v1333_v3 = vadd.f32 %v3195_v62, %v1320_v1  ;;  %v1326_v16 = vadd.f32 %v1320_v1, %v1076_v14 }
0x1b77   :  { %v2581_v4 = vpop.f32.mrf.mxu1 }
0x1b78   :  { %1335 = vrot.lane.b32.xlu0 %v1333_v3, %s2853_s1  ;;  %v2349_v17 = vmul.f32 -1.442695, %v1326_v16 }
0x1b79   :  { %v1323_v12 = vpop.f32.mrf.mxu1 }
0x1b7a   :  { %2706 = vpow2.f32 %v2349_v17 }
0x1b7b   :  { %v2582_v13 = vpop.f32.mrf.mxu1 }
0x1b87   :  { %v2707_v18 = vpop.eup %2706 }
0x1b88   :  { %v1330_v19 = vadd.f32 1.0, %v2707_v18 }
0x1b8a   :  { %2708 = vrcp.f32 %v1330_v19 }
0x1b97   :  { %v2709_v20 = vpop.eup %2708 }
0x1b98   :  { %v1345_v26 = vsub.f32 1.0, %v2709_v20  ;;  %v1351_v7 = vmul.f32 %v2709_v20, %v3233_v57 }
0x1bea   :  { %v1336_v21 = vpop.permute.xlu0 %1335 }
0x1beb   :  { %v1338_v23 = vmul.f32 %v2709_v20, %v1336_v21 }
0x1bed   :  { %1340 = vrot.lane.b32.xlu1 %v1338_v23, %s2854_s19 }
0x1c5f   :  { %v1341_v15 = vpop.permute.xlu1 %1340 }
0x1c60   :  { %v1343_v24 = vadd.f32 %v1341_v15, %v1076_v14 }
0x1c62   :  { %2710 = vtanh.f32 %v1343_v24 }
0x1c6f   :  { %v2711_v25 = vpop.eup %2710 }
0x1c70   :  { %1347 = vrot.lane.b32.xlu0 %v2711_v25, %s2855_s20 }
0x1ce2   :  { %v1348_v27 = vpop.permute.xlu0 %1347 }
0x1ce3   :  { %v1350_v30 = vmul.f32 %v1348_v27, %v1345_v26 }
0x1ce5   :  { %v3260_v32 = vadd.f32 %v1351_v7, %v1350_v30 }
0x1ce7   :  { %v1359_v33 = vpack.c.bf16 %v3260_v32, %v3260_v32 }
0x1ce9   :  { %1361 = vrot.lane.b32.xlu1 %v1359_v33, %s2855_s20 }
0x1d5b   :  { %v1362_v34 = vpop.permute.xlu1 %1361 }
0x1d5c   :  { %2588 = vmatmul.mubr.msk.bf16.vlgmr.msra.gmra.mxu0 %vm334_vm1, %v1362_v34  ;;  %v1087_v34 = vadd.f32 %v3204_v9, %v3251_v0 }
0x1d5d   :  { %2600 = vmatpush3.bf16.msra.mxu0 %v3170_v53  ;;  %2603 = vmatprep.mubr.msk.bf16.mxu0 %vm2851_vm0, %v2850_v5 }
0x1d5e   :  { %2601 = vmatprep.subr.bf16.mxu0 %v2850_v5 }
0x1d61   :  { %2602 = vmatpush3.bf16.msra.mxu0 %v3173_v56 }
0x1d62   :  { %2615 = vmatprep.subr.bf16.mxu0 %v2850_v5 }
0x1e1c   :  { %v1400_v35 = vpop.f32.mrf.mxu0 }
0x1e1d   :  { %v1413_v37 = vadd.f32 %v3195_v62, %v1400_v35  ;;  %v1406_v44 = vadd.f32 %v1400_v35, %v1079_v43 }
0x1e1e   :  { %v2589_v39 = vpop.f32.mrf.mxu0 }
0x1e1f   :  { %1415 = vrot.lane.b32.xlu0 %v1413_v37, %s2853_s1  ;;  %v2351_v22 = vmul.f32 -1.442695, %v1406_v44 }
0x1e20   :  { %v1403_v40 = vpop.f32.mrf.mxu0 }
0x1e21   :  { %2712 = vpow2.f32 %v2351_v22 }
0x1e22   :  { %v2590_v42 = vpop.f32.mrf.mxu0 }
0x1e2e   :  { %v2713_v29 = vpop.eup %2712 }
0x1e2f   :  { %v1410_v38 = vadd.f32 1.0, %v2713_v29 }
0x1e31   :  { %2714 = vrcp.f32 %v1410_v38 }
0x1e3e   :  { %v2715_v6 = vpop.eup %2714 }
0x1e3f   :  { %v1425_v2 = vsub.f32 1.0, %v2715_v6  ;;  %v1431_v41 = vmul.f32 %v2715_v6, %v3260_v32 }
0x1e91   :  { %v1416_v45 = vpop.permute.xlu0 %1415 }
0x1e92   :  { %v1418_v46 = vmul.f32 %v2715_v6, %v1416_v45 }
0x1e94   :  { %1420 = vrot.lane.b32.xlu1 %v1418_v46, %s2854_s19 }
0x1f06   :  { %v1421_v47 = vpop.permute.xlu1 %1420 }
0x1f07   :  { %v1423_v10 = vadd.f32 %v1421_v47, %v1079_v43 }
0x1f09   :  { %2716 = vtanh.f32 %v1423_v10 }
0x1f16   :  { %v2717_v36 = vpop.eup %2716 }
0x1f17   :  { %1427 = vrot.lane.b32.xlu0 %v2717_v36, %s2855_s20 }
0x1f89   :  { %v1428_v28 = vpop.permute.xlu0 %1427 }
0x1f8a   :  { %v1430_v48 = vmul.f32 %v1428_v28, %v1425_v2 }
0x1f8c   :  { %v3279_v49 = vadd.f32 %v1431_v41, %v1430_v48  ;;  %v1092_v41 = vadd.f32 %v3245_v60, %v3204_v9 }
0x1f8e   :  { %v1439_v8 = vpack.c.bf16 %v3279_v49, %v3279_v49 }
0x1f90   :  { %1441 = vrot.lane.b32.xlu1 %v1439_v8, %s2855_s20 }
0x2002   :  { %v1442_v50 = vpop.permute.xlu1 %1441 }
0x2003   :  { %2596 = vmatmul.mubr.msk.bf16.vlgmr.msra.gmra.mxu1 %vm334_vm1, %v1442_v50 }
0x2004   :  { %2608 = vmatpush3.bf16.msra.mxu1 %v3170_v53  ;;  %2611 = vmatprep.mubr.msk.bf16.mxu1 %vm2851_vm0, %v2850_v5 }
0x2005   :  { %2609 = vmatprep.subr.bf16.mxu1 %v2850_v5 }
0x2008   :  { %2610 = vmatpush3.bf16.msra.mxu1 %v3173_v56 }
0x20c3   :  { %v1480_v51 = vpop.f32.mrf.mxu1 }
0x20c4   :  { %v1493_v52 = vadd.f32 %v3195_v62, %v1480_v51  ;;  %v1486_v1 = vadd.f32 %v1480_v51, %v1084_v59 }
0x20c5   :  { %v2597_v55 = vpop.f32.mrf.mxu1 }
0x20c6   :  { %1495 = vrot.lane.b32.xlu0 %v1493_v52, %s2853_s1  ;;  %v2353_v3 = vmul.f32 -1.442695, %v1486_v1 }
0x20c7   :  { %v1483_v54 = vpop.f32.mrf.mxu1 }
0x20c8   :  { %2718 = vpow2.f32 %v2353_v3 }
0x20c9   :  { %v2598_v58 = vpop.f32.mrf.mxu1 }
0x20d5   :  { %v2719_v4 = vpop.eup %2718 }
0x20d6   :  { %v1490_v12 = vadd.f32 1.0, %v2719_v4 }
0x20d8   :  { %2720 = vrcp.f32 %v1490_v12 }
0x20e5   :  { %v2721_v13 = vpop.eup %2720 }
0x20e6   :  { %v1505_v20 = vsub.f32 1.0, %v2721_v13  ;;  %v1511_v61 = vmul.f32 %v2721_v13, %v3279_v49 }
0x2138   :  { %v1496_v14 = vpop.permute.xlu0 %1495 }
0x2139   :  { %v1498_v16 = vmul.f32 %v2721_v13, %v1496_v14 }
0x213b   :  { %1500 = vrot.lane.b32.xlu1 %v1498_v16, %s2854_s19 }
0x21ad   :  { %v1501_v17 = vpop.permute.xlu1 %1500 }
0x21ae   :  { %v1503_v18 = vadd.f32 %v1501_v17, %v1084_v59 }
0x21b0   :  { %2722 = vtanh.f32 %v1503_v18 }
0x21bd   :  { %v2723_v19 = vpop.eup %2722 }
0x21be   :  { %1507 = vrot.lane.b32.xlu0 %v2723_v19, %s2855_s20 }
0x2230   :  { %v1508_v21 = vpop.permute.xlu0 %1507 }
0x2231   :  { %v1510_v23 = vmul.f32 %v1508_v21, %v1505_v20 }
0x2233   :  { %v3297_v15 = vadd.f32 %v1511_v61, %v1510_v23  ;;  %v1095_v61 = vadd.f32 %v3249_v63, %v3204_v9 }
0x2235   :  { %v1519_v24 = vpack.c.bf16 %v3297_v15, %v3297_v15 }
0x2237   :  { %1521 = vrot.lane.b32.xlu1 %v1519_v24, %s2855_s20 }
0x22a9   :  { %v1522_v25 = vpop.permute.xlu1 %1521 }
0x22aa   :  { %2604 = vmatmul.mubr.msk.bf16.vlgmr.msra.gmra.mxu0 %vm334_vm1, %v1522_v25 }
0x22ab   :  { %2616 = vmatpush3.bf16.msra.mxu0 %v3170_v53  ;;  %2619 = vmatprep.mubr.msk.bf16.mxu0 %vm2851_vm0, %v2850_v5 }
0x22ac   :  { %2617 = vmatprep.subr.bf16.mxu0 %v2850_v5 }
0x22af   :  { %2618 = vmatpush3.bf16.msra.mxu0 %v3173_v56 }
0x236a   :  { %v1560_v26 = vpop.f32.mrf.mxu0 }
0x236b   :  { %v1573_v27 = vadd.f32 %v3195_v62, %v1560_v26  ;;  %v1566_v35 = vadd.f32 %v1560_v26, %v1087_v34 }
0x236c   :  { %v2605_v7 = vpop.f32.mrf.mxu0 }
0x236d   :  { %1575 = vrot.lane.b32.xlu0 %v1573_v27, %s2853_s1  ;;  %v2355_v53 = vmul.f32 -1.442695, %v1566_v35 }
0x236e   :  { %v1563_v30 = vpop.f32.mrf.mxu0 }
0x236f   :  { %2724 = vpow2.f32 %v2355_v53 }
0x2370   :  { %v2606_v33 = vpop.f32.mrf.mxu0 }
0x237c   :  { %v2725_v37 = vpop.eup %2724 }
0x237d   :  { %v1570_v39 = vadd.f32 1.0, %v2725_v37 }
0x237f   :  { %2726 = vrcp.f32 %v1570_v39 }
0x238c   :  { %v2727_v5 = vpop.eup %2726 }
0x238d   :  { %v1585_v22 = vsub.f32 1.0, %v2727_v5  ;;  %v1591_v0 = vmul.f32 %v2727_v5, %v3297_v15 }
0x23df   :  { %v1576_v40 = vpop.permute.xlu0 %1575 }
0x23e0   :  { %v1578_v56 = vmul.f32 %v2727_v5, %v1576_v40 }
0x23e2   :  { %1580 = vrot.lane.b32.xlu1 %v1578_v56, %s2854_s19 }
0x2454   :  { %v1581_v42 = vpop.permute.xlu1 %1580 }
0x2455   :  { %v1583_v43 = vadd.f32 %v1581_v42, %v1087_v34 }
0x2457   :  { %2728 = vtanh.f32 %v1583_v43 }
0x2464   :  { %v2729_v44 = vpop.eup %2728 }
0x2465   :  { %1587 = vrot.lane.b32.xlu0 %v2729_v44, %s2855_s20 }
0x24d7   :  { %v1588_v29 = vpop.permute.xlu0 %1587 }
0x24d8   :  { %v1590_v38 = vmul.f32 %v1588_v29, %v1585_v22 }
0x24da   :  { %v3315_v6 = vadd.f32 %v1591_v0, %v1590_v38 }
0x24dc   :  { %v1599_v45 = vpack.c.bf16 %v3315_v6, %v3315_v6 }
0x24de   :  { %1601 = vrot.lane.b32.xlu1 %v1599_v45, %s2855_s20 }
0x2550   :  { %v1602_v46 = vpop.permute.xlu1 %1601 }
0x2551   :  { %2612 = vmatmul.mubr.msk.bf16.vlgmr.msra.gmra.mxu1 %vm334_vm1, %v1602_v46 }
0x2611   :  { %v1640_v47 = vpop.f32.mrf.mxu1 }
0x2612   :  { %v1653_v10 = vadd.f32 %v3195_v62, %v1640_v47  ;;  %v1646_v48 = vadd.f32 %v1640_v47, %v1092_v41 }
0x2613   :  { %v2613_v36 = vpop.f32.mrf.mxu1 }
0x2614   :  { %1655 = vrot.lane.b32.xlu0 %v1653_v10, %s2853_s1  ;;  %v2357_v8 = vmul.f32 -1.442695, %v1646_v48 }
0x2615   :  { %v1643_v2 = vpop.f32.mrf.mxu1 }
0x2616   :  { %2730 = vpow2.f32 %v2357_v8 }
0x2617   :  { %v2614_v28 = vpop.f32.mrf.mxu1 }
0x2623   :  { %v2731_v50 = vpop.eup %2730 }
0x2624   :  { %v1650_v51 = vadd.f32 1.0, %v2731_v50 }
0x2626   :  { %2732 = vrcp.f32 %v1650_v51 }
0x2633   :  { %v2733_v52 = vpop.eup %2732 }
0x2634   :  { %v1665_v3 = vsub.f32 1.0, %v2733_v52  ;;  %v1671_v60 = vmul.f32 %v2733_v52, %v3315_v6 }
0x2686   :  { %v1656_v55 = vpop.permute.xlu0 %1655 }
0x2687   :  { %v1658_v54 = vmul.f32 %v2733_v52, %v1656_v55 }
0x2689   :  { %1660 = vrot.lane.b32.xlu1 %v1658_v54, %s2854_s19 }
0x26fb   :  { %v1661_v58 = vpop.permute.xlu1 %1660 }
0x26fc   :  { %v1663_v59 = vadd.f32 %v1661_v58, %v1092_v41 }
0x26fe   :  { %2734 = vtanh.f32 %v1663_v59 }
0x270b   :  { %v2735_v1 = vpop.eup %2734 }
0x270c   :  { %1667 = vrot.lane.b32.xlu0 %v2735_v1, %s2855_s20 }
0x277e   :  { %v1668_v4 = vpop.permute.xlu0 %1667 }
0x277f   :  { %v1670_v12 = vmul.f32 %v1668_v4, %v1665_v3 }
0x2781   :  { %v1672_v13 = vadd.f32 %v1671_v60, %v1670_v12 }
0x2783   :  { %v1679_v14 = vpack.c.bf16 %v1672_v13, %v1672_v13 }
0x2785   :  { %1681 = vrot.lane.b32.xlu1 %v1679_v14, %s2855_s20 }
0x27f7   :  { %v1682_v16 = vpop.permute.xlu1 %1681 }
0x27f8   :  { %2620 = vmatmul.mubr.msk.bf16.vlgmr.msra.gmra.mxu0 %vm334_vm1, %v1682_v16 }
0x28b8   :  { %v1720_v17 = vpop.f32.mrf.mxu0 }
0x28b9   :  { %v1733_v18 = vadd.f32 %v3195_v62, %v1720_v17  ;;  %v1726_v23 = vadd.f32 %v1720_v17, %v1095_v61 }
0x28ba   :  { %v2621_v19 = vpop.f32.mrf.mxu0 }
0x28bb   :  { %1735 = vrot.lane.b32.xlu0 %v1733_v18, %s2853_s1  ;;  %v2359_v24 = vmul.f32 -1.442695, %v1726_v23 }
0x28bc   :  { %v1723_v20 = vpop.f32.mrf.mxu0 }
0x28bd   :  { %2736 = vpow2.f32 %v2359_v24 }
0x28be   :  { %v2622_v21 = vpop.f32.mrf.mxu0 }
0x28ca   :  { %v2737_v25 = vpop.eup %2736 }
0x28cb   :  { %v1730_v26 = vadd.f32 1.0, %v2737_v25 }
0x28cd   :  { %2738 = vrcp.f32 %v1730_v26 }
0x28da   :  { %v2739_v27 = vpop.eup %2738 }
0x28db   :  { %v1751_v37 = vmul.f32 %v2739_v27, %v1672_v13 }
0x292d   :  { %v1736_v7 = vpop.permute.xlu0 %1735 }
0x292e   :  { %v1738_v30 = vmul.f32 %v2739_v27, %v1736_v7 }
0x2930   :  { %1740 = vrot.lane.b32.xlu1 %v1738_v30, %s2854_s19 }
0x2934   :  { %1194 = vrot.lane.b32.xlu1 %v3209_v31, %s2855_s20 }
0x2938   :  { %1354 = vrot.lane.b32.xlu1 %v3260_v32, %s2855_s20  ;;  %v1745_v32 = vsub.f32 1.0, %v2739_v27 }
0x293c   :  { %1514 = vrot.lane.b32.xlu1 %v3297_v15, %s2855_s20 }
0x2940   :  { %1674 = vrot.lane.b32.xlu1 %v1672_v13, %s2855_s20 }
0x29a2   :  { %v1741_v62 = vpop.permute.xlu1 %1740 }
0x29a3   :  { %v1743_v9 = vadd.f32 %v1741_v62, %v1095_v61 }
0x29a5   :  { %2740 = vtanh.f32 %v1743_v9 }
0x29a6   :  { %v1195_v63 = vpop.permute.xlu1 %1194 }
0x29a7   :  { %1197 = vst.msk [vmem:[#allocation3] sm:$0xff] %vm334_vm1, %v1195_v63 }
0x29aa   :  { %v1355_v33 = vpop.permute.xlu1 %1354 }
0x29ab   :  { %1357 = vst.msk [vmem:[#allocation3 + $0x10] sm:$0xff] %vm334_vm1, %v1355_v33 }
0x29ae   :  { %v1515_v34 = vpop.permute.xlu1 %1514 }
0x29af   :  { %1517 = vst.msk [vmem:[#allocation3 + $0x20] sm:$0xff] %vm334_vm1, %v1515_v34 }
0x29b2   :  { %v2741_v31 = vpop.eup %2740  ;;  %v1675_v35 = vpop.permute.xlu1 %1674 }
0x29b3   :  { %1677 = vst.msk [vmem:[#allocation3 + $0x30] sm:$0xff] %vm334_vm1, %v1675_v35  ;;  %1747 = vrot.lane.b32.xlu0 %v2741_v31, %s2855_s20 }
0x29b7   :  { %1274 = vrot.lane.b32.xlu0 %v3233_v57, %s2855_s20 }
0x29bb   :  { %1434 = vrot.lane.b32.xlu0 %v3279_v49, %s2855_s20 }
0x29bf   :  { %1594 = vrot.lane.b32.xlu0 %v3315_v6, %s2855_s20 }
0x2a25   :  { %v1748_v15 = vpop.permute.xlu0 %1747 }
0x2a26   :  { %v1750_v53 = vmul.f32 %v1748_v15, %v1745_v32 }
0x2a28   :  { %v1752_v39 = vadd.f32 %v1751_v37, %v1750_v53 }
0x2a29   :  { %v1275_v5 = vpop.permute.xlu0 %1274 }
0x2a2a   :  { %1277 = vst.msk [vmem:[#allocation3 + $0x8] sm:$0xff] %vm334_vm1, %v1275_v5  ;;  %1754 = vrot.lane.b32.xlu0 %v1752_v39, %s2855_s20 }
0x2a2d   :  { %v1435_v40 = vpop.permute.xlu0 %1434 }
0x2a2e   :  { %1437 = vst.msk [vmem:[#allocation3 + $0x18] sm:$0xff] %vm334_vm1, %v1435_v40 }
0x2a31   :  { %v1595_v57 = vpop.permute.xlu0 %1594 }
0x2a32   :  { %1597 = vst.msk [vmem:[#allocation3 + $0x28] sm:$0xff] %vm334_vm1, %v1595_v57 }
0x2a35   :  { %v1758_v56 = vld [vmem:[#allocation3] ss:$8 sm:$0xf]  ;;  %v1763_v42 = vld [vmem:[#allocation3 + $0x1] ss:$8 sm:$0xf] }
0x2a9c   :  { %v1755_v49 = vpop.permute.xlu0 %1754 }
0x2a9d   :  { %1757 = vst.msk [vmem:[#allocation3 + $0x38] sm:$0xff] %vm334_vm1, %v1755_v49 }
0x2aa4   :  { %v1759_v43 = vld [vmem:[#allocation3] ss:$8 sm:$0xf0]  ;;  %v1764_v44 = vld [vmem:[#allocation3 + $0x1] ss:$8 sm:$0xf0] }
0x2aa5   :  { %v1760_v22 = vor.u32 %v1759_v43, %v1758_v56  ;;  %v1765_v29 = vor.u32 %v1764_v44, %v1763_v42 }
0x2aa7   :  { %1761 = vst.msk [vmem:[#allocation4] sm:$0xff] %vm334_vm1, %v1760_v22  ;;  %1766 = vst.msk [vmem:[#allocation4 + $0x8] sm:$0xff] %vm334_vm1, %v1765_v29 }
0x2aa8   :  { %2846 = dma.done.wait [#allocation8 + $0x2], 3072 }
0x2aa9   :  { %2847 = vsyncadd [#allocation8 + $0x2], 4294964224  ;;  %2016 = vmatprep.mubr.bf16.mxu1 %v2852_v11  ;;  %2059 = vmatprep.mubr.bf16.mxu0 %v2852_v11  ;;  %v2742_v0 = vld [vmem:[#allocation7 + $0x64] ss:$48 sps:$4 sm:$0xff]   ;;  %v2744_v38 = vld [vmem:[#allocation7 + $0x6c] ss:$48 sps:$4 sm:$0xff]   ;;  %v1801_v16 = vlaneseq }
0x2aaa   :  { %1996 = vmatprep.subr.bf16.mxu1 %v2742_v0  ;;  %v2746_v6 = vld [vmem:[#allocation7 + $0x60] ss:$48 sps:$4 sm:$0xff]   ;;  %v2747_v45 = vld [vmem:[#allocation7 + $0x68] ss:$48 sps:$4 sm:$0xff]   ;;  %2039 = vmatprep.subr.bf16.mxu0 %v2744_v38  ;;  %v2748_v46 = vld [vmem:[#allocation7 + $0x4] ss:$48 sps:$4 sm:$0xff]  }
0x2aab   :  { %1997 = vmatpush1.bf16.msra.mxu1 %v2746_v6  ;;  %2040 = vmatpush1.bf16.msra.mxu0 %v2747_v45  ;;  %v2750_v47 = vld [vmem:[#allocation7 + $0xc] ss:$48 sps:$4 sm:$0xff]   ;;  %v2752_v10 = vld [vmem:[#allocation7] ss:$48 sps:$4 sm:$0xff]   ;;  %v2753_v36 = vld [vmem:[#allocation7 + $0x8] ss:$48 sps:$4 sm:$0xff]  }
0x2aac   :  { %1998 = vmatprep.subr.bf16.mxu1 %v2748_v46  ;;  %2041 = vmatprep.subr.bf16.mxu0 %v2750_v47  ;;  %v2754_v41 = vld [vmem:[#allocation7 + $0x70] ss:$48 sps:$4 sm:$0xff]   ;;  %v2756_v8 = vld [vmem:[#allocation7 + $0x74] ss:$48 sps:$4 sm:$0xff]   ;;  %v2757_v50 = vld [vmem:[#allocation7 + $0x78] ss:$48 sps:$4 sm:$0xff]  }
0x2aad   :  { %v2759_v51 = vld [vmem:[#allocation7 + $0x7c] ss:$48 sps:$4 sm:$0xff]   ;;  %v2762_v52 = vld [vmem:[#allocation7 + $0x14] ss:$48 sps:$4 sm:$0xff]   ;;  %v2760_v54 = vld [vmem:[#allocation7 + $0x10] ss:$48 sps:$4 sm:$0xff]  }
0x2aae   :  { %v1770_v2 = vld [vmem:[#allocation4] sm:$0xff]  ;;  %v1771_v28 = vld [vmem:[#allocation4 + $0x8] sm:$0xff]  ;;  %v3372_v17 = vshrl.u32 %v1801_v16, 7 }
0x2aaf   :  { %v1772_v48 = vpack.c.bf16 %v1771_v28, %v1770_v2  ;;  %1999 = vmatpush1.bf16.msra.mxu1 %v2752_v10  ;;  %2042 = vmatpush1.bf16.msra.mxu0 %v2753_v36  ;;  %v2765_v55 = vld [vmem:[#allocation7 + $0x1c] ss:$48 sps:$4 sm:$0xff]   ;;  %v2763_v58 = vld [vmem:[#allocation7 + $0x18] ss:$48 sps:$4 sm:$0xff]   ;;  %v2768_v59 = vld [vmem:[#allocation7 + $0x84] ss:$48 sps:$4 sm:$0xff]  }
0x2ab0   :  { %2082 = vmatprep.subr.bf16.mxu1 %v2756_v8  ;;  %2125 = vmatprep.subr.bf16.mxu0 %v2759_v51  ;;  %v2771_v1 = vld [vmem:[#allocation7 + $0x8c] ss:$48 sps:$4 sm:$0xff]   ;;  %v2766_v3 = vld [vmem:[#allocation7 + $0x80] ss:$48 sps:$4 sm:$0xff]   ;;  %v2769_v4 = vld [vmem:[#allocation7 + $0x88] ss:$48 sps:$4 sm:$0xff]  }
0x2ab1   :  { %v2774_v60 = vld [vmem:[#allocation7 + $0x24] ss:$48 sps:$4 sm:$0xff]   ;;  %v2777_v12 = vld [vmem:[#allocation7 + $0x2c] ss:$48 sps:$4 sm:$0xff]   ;;  %v2772_v13 = vld [vmem:[#allocation7 + $0x20] ss:$48 sps:$4 sm:$0xff]  }
0x2ab2   :  { %2384 = vmatmul.mubr.msk.bf16.vlgmr.msra.gmra.mxu1 %vm334_vm1, %v1772_v48  ;;  %2385 = vmatmul.mubr.msk.bf16.vlgmr.msra.gmra.mxu0 %vm334_vm1, %v1772_v48  ;;  %v2775_v14 = vld [vmem:[#allocation7 + $0x28] ss:$48 sps:$4 sm:$0xff]   ;;  %v1803_v18 = vsub.s32 0, %v3372_v17  ;;  %v1811_v19 = vsub.s32 2, %v3372_v17  ;;  %v1797_v20 = vld [vmem:[%s3475_s7] sm:$0xff]  ;;  %v1807_v21 = vsub.s32 1, %v3372_v17 }
0x2ab3   :  { %2083 = vmatpush1.bf16.msra.mxu1 %v2754_v41  ;;  %2126 = vmatpush1.bf16.msra.mxu0 %v2757_v50  ;;  %v1819_v62 = vsub.s32 4, %v3372_v17  ;;  %v1827_v9 = vsub.s32 6, %v3372_v17  ;;  %v1823_v35 = vsub.s32 5, %v3372_v17  ;;  %v1831_v32 = vsub.s32 7, %v3372_v17  ;;  %v1798_v46 = vld [vmem:[%s3475_s7 + $0x8] sm:$0xf] }
0x2ab4   :  { %2084 = vmatprep.subr.bf16.mxu1 %v2762_v52  ;;  %2127 = vmatprep.subr.bf16.mxu0 %v2765_v55  ;;  %v1804_v61 = vrot.slane %v1797_v20, %v1803_v18  ;;  %v1812_v23 = vrot.slane %v1797_v20, %v1811_v19  ;;  %v1808_v24 = vrot.slane %v1797_v20, %v1807_v21 }
0x2ab5   :  { %2102 = vmatprep.mubr.bf16.mxu1 %v2852_v11  ;;  %2145 = vmatprep.mubr.bf16.mxu0 %v2852_v11  ;;  %v1820_v5 = vrot.slane %v1797_v20, %v1819_v62  ;;  %v1828_v40 = vrot.slane %v1797_v20, %v1827_v9  ;;  %v1824_v43 = vrot.slane %v1797_v20, %v1823_v35 }
0x2ab6   :  { %v1832_v44 = vrot.slane %v1797_v20, %v1831_v32  ;;  %v1844_v8 = vrot.slane %v1798_v46, %v1811_v19 }
0x2ab7   :  { %2085 = vmatpush1.bf16.msra.mxu1 %v2760_v54  ;;  %2128 = vmatpush1.bf16.msra.mxu0 %v2763_v58  ;;  %v1840_v54 = vrot.slane %v1798_v46, %v1807_v21 }
0x2ab8   :  { %2168 = vmatprep.subr.bf16.mxu1 %v2768_v59  ;;  %2211 = vmatprep.subr.bf16.mxu0 %v2771_v1 }
0x2aba   :  { %2386 = vmatmul.mubr.msk.bf16.vlgmr.msra.gmra.mxu1 %vm334_vm1, %v1772_v48  ;;  %2387 = vmatmul.mubr.msk.bf16.vlgmr.msra.gmra.mxu0 %vm334_vm1, %v1772_v48 }
0x2abb   :  { %2169 = vmatpush1.bf16.msra.mxu1 %v2766_v3  ;;  %2212 = vmatpush1.bf16.msra.mxu0 %v2769_v4 }
0x2abc   :  { %2170 = vmatprep.subr.bf16.mxu1 %v2774_v60  ;;  %2213 = vmatprep.subr.bf16.mxu0 %v2777_v12 }
0x2abd   :  { %2188 = vmatprep.mubr.bf16.mxu1 %v2852_v11  ;;  %2231 = vmatprep.mubr.bf16.mxu0 %v2852_v11  ;;  %v1815_v11 = vsub.s32 3, %v3372_v17 }
0x2abf   :  { %2171 = vmatpush1.bf16.msra.mxu1 %v2772_v13  ;;  %2214 = vmatpush1.bf16.msra.mxu0 %v2775_v14  ;;  %v1816_v25 = vrot.slane %v1797_v20, %v1815_v11  ;;  %v1848_v58 = vrot.slane %v1798_v46, %v1815_v11 }
0x2ac2   :  { %2388 = vmatmul.mubr.msk.bf16.vlgmr.msra.gmra.mxu1 %vm334_vm1, %v1772_v48  ;;  %2389 = vmatmul.mubr.msk.bf16.vlgmr.msra.gmra.mxu0 %vm334_vm1, %v1772_v48  ;;  %v1836_v48 = vrot.slane %v1798_v46, %v1803_v18 }
0x2b72   :  { %v2018_v26 = vpop.f32.mrf.mxu1  ;;  %v2061_v27 = vpop.f32.mrf.mxu0 }
0x2b73   :  { %v2019_v7 = vadd.f32 %v2018_v26, %v1804_v61  ;;  %v2062_v30 = vadd.f32 %v2061_v27, %v1812_v23 }
0x2b74   :  { %v2020_v63 = vpop.f32.mrf.mxu1  ;;  %v2063_v33 = vpop.f32.mrf.mxu0 }
0x2b75   :  { %2242 = vst [vmem:[%s3479_s11] sm:$0xff] %v2019_v7  ;;  %2244 = vst [vmem:[%s3479_s11 + $0x10] sm:$0xff] %v2062_v30  ;;  %v2021_v34 = vadd.f32 %v2020_v63, %v1808_v24  ;;  %v2064_v31 = vadd.f32 %v2063_v33, %v1816_v25 }
0x2b76   :  { %v2022_v15 = vpop.f32.mrf.mxu1  ;;  %v2065_v53 = vpop.f32.mrf.mxu0 }
0x2b77   :  { %2243 = vst [vmem:[%s3479_s11 + $0x8] sm:$0xff] %v2021_v34  ;;  %2245 = vst [vmem:[%s3479_s11 + $0x18] sm:$0xff] %v2064_v31  ;;  %v2023_v37 = vadd.f32 %v2022_v15, %v1804_v61  ;;  %v2066_v39 = vadd.f32 %v2065_v53, %v1812_v23 }
0x2b78   :  { %v2024_v57 = vpop.f32.mrf.mxu1  ;;  %v2067_v49 = vpop.f32.mrf.mxu0 }
0x2b79   :  { %2254 = vst [vmem:[%s3479_s11 + $0x60] sm:$0xff] %v2023_v37  ;;  %2256 = vst [vmem:[%s3479_s11 + $0x70] sm:$0xff] %v2066_v39  ;;  %v2025_v56 = vadd.f32 %v2024_v57, %v1808_v24  ;;  %v2068_v42 = vadd.f32 %v2067_v49, %v1816_v25 }
0x2b7a   :  { %v2104_v22 = vpop.f32.mrf.mxu1  ;;  %v2147_v29 = vpop.f32.mrf.mxu0 }
0x2b7b   :  { %2255 = vst [vmem:[%s3479_s11 + $0x68] sm:$0xff] %v2025_v56  ;;  %2257 = vst [vmem:[%s3479_s11 + $0x78] sm:$0xff] %v2068_v42  ;;  %v2105_v0 = vadd.f32 %v2104_v22, %v1820_v5  ;;  %v2148_v38 = vadd.f32 %v2147_v29, %v1828_v40 }
0x2b7c   :  { %v2106_v6 = vpop.f32.mrf.mxu1  ;;  %v2149_v45 = vpop.f32.mrf.mxu0 }
0x2b7d   :  { %2246 = vst [vmem:[%s3479_s11 + $0x20] sm:$0xff] %v2105_v0  ;;  %2248 = vst [vmem:[%s3479_s11 + $0x30] sm:$0xff] %v2148_v38  ;;  %v2107_v47 = vadd.f32 %v2106_v6, %v1824_v43  ;;  %v2150_v10 = vadd.f32 %v2149_v45, %v1832_v44 }
0x2b7e   :  { %v2108_v36 = vpop.f32.mrf.mxu1  ;;  %v2151_v2 = vpop.f32.mrf.mxu0 }
0x2b7f   :  { %2247 = vst [vmem:[%s3479_s11 + $0x28] sm:$0xff] %v2107_v47  ;;  %2249 = vst [vmem:[%s3479_s11 + $0x38] sm:$0xff] %v2150_v10  ;;  %v2109_v28 = vadd.f32 %v2108_v36, %v1820_v5  ;;  %v2152_v41 = vadd.f32 %v2151_v2, %v1828_v40 }
0x2b80   :  { %v2110_v50 = vpop.f32.mrf.mxu1  ;;  %v2153_v51 = vpop.f32.mrf.mxu0 }
0x2b81   :  { %2258 = vst [vmem:[%s3479_s11 + $0x80] sm:$0xff] %v2109_v28  ;;  %2260 = vst [vmem:[%s3479_s11 + $0x90] sm:$0xff] %v2152_v41  ;;  %v2111_v52 = vadd.f32 %v2110_v50, %v1824_v43  ;;  %v2154_v55 = vadd.f32 %v2153_v51, %v1832_v44 }
0x2b82   :  { %v2190_v59 = vpop.f32.mrf.mxu1  ;;  %v2233_v1 = vpop.f32.mrf.mxu0 }
0x2b83   :  { %2259 = vst [vmem:[%s3479_s11 + $0x88] sm:$0xff] %v2111_v52  ;;  %2261 = vst [vmem:[%s3479_s11 + $0x98] sm:$0xff] %v2154_v55  ;;  %v2191_v3 = vadd.f32 %v2190_v59, %v1836_v48  ;;  %v2234_v4 = vadd.f32 %v2233_v1, %v1844_v8 }
0x2b84   :  { %v2192_v60 = vpop.f32.mrf.mxu1  ;;  %v2235_v12 = vpop.f32.mrf.mxu0 }
0x2b85   :  { %2250 = vst [vmem:[%s3479_s11 + $0x40] sm:$0xff] %v2191_v3  ;;  %2252 = vst [vmem:[%s3479_s11 + $0x50] sm:$0xff] %v2234_v4  ;;  %v2193_v13 = vadd.f32 %v2192_v60, %v1840_v54  ;;  %v2236_v14 = vadd.f32 %v2235_v12, %v1848_v58 }
0x2b86   :  { %v2194_v16 = vpop.f32.mrf.mxu1  ;;  %v2237_v17 = vpop.f32.mrf.mxu0 }
0x2b87   :  { %2251 = vst [vmem:[%s3479_s11 + $0x48] sm:$0xff] %v2193_v13  ;;  %2253 = vst [vmem:[%s3479_s11 + $0x58] sm:$0xff] %v2236_v14  ;;  %v2195_v18 = vadd.f32 %v2194_v16, %v1836_v48  ;;  %v2238_v19 = vadd.f32 %v2237_v17, %v1844_v8 }
0x2b88   :  { %v2196_v20 = vpop.f32.mrf.mxu1  ;;  %v2239_v21 = vpop.f32.mrf.mxu0 }
0x2b89   :  { %2262 = vst [vmem:[%s3479_s11 + $0xa0] sm:$0xff] %v2195_v18  ;;  %2264 = vst [vmem:[%s3479_s11 + $0xb0] sm:$0xff] %v2238_v19  ;;  %v2197_v11 = vadd.f32 %v2196_v20, %v1840_v54  ;;  %v2240_v61 = vadd.f32 %v2239_v21, %v1848_v58 }
0x2b8b   :  { %2263 = vst [vmem:[%s3479_s11 + $0xa8] sm:$0xff] %v2197_v11  ;;  %2265 = vst [vmem:[%s3479_s11 + $0xb8] sm:$0xff] %v2240_v61 }
0x2b8c   :  { %2270 = vsyncpa [#allocation10], 1 }
0x2b8d   :  { %2271 = vsyncpa [#allocation12], 1 }
0x2b8e   :  { %2272 = vsyncmov [#allocation8] }
0x2b91   :  { %s2273_s28 = vpop.sfrf %2272 }
0x2b92   :  { %p2390_p1 = scmp.ne.s32.totalorder %s2273_s28, 0 }
0x2b94   :  { %2277 = shalt.err (%p2390_p1)  }
0x2b95   :  { %2279 = vsyncmov [#allocation8 + $0x1] }
0x2b98   :  { %s2280_s29 = vpop.sfrf %2279 }
0x2b99   :  { %p2391_p2 = scmp.ne.s32.totalorder %s2280_s29, 0 }
0x2b9b   :  { %2284 = shalt.err (%p2391_p2)  }
0x2b9c   :  { %2286 = vsyncmov [#allocation8 + $0x2] }
0x2b9f   :  { %s2287_s30 = vpop.sfrf %2286 }
0x2ba0   :  { %p2392_p3 = scmp.ne.s32.totalorder %s2287_s30, 0 }
0x2ba2   :  { %2291 = shalt.err (%p2392_p3)  }

</bundles_post_ra>
